<compile_context>
chip_gen: v6e
topology: v6e:2x2x1
jax: 0.10.0
libtpu: 0.0.40
codegen_flags: <defaults>
</compile_context>

<pallas_src>
import functools

import jax
import jax.numpy as jnp
import numpy as np
from jax import lax
from jax.experimental import pallas as pl
from jax.experimental.pallas import tpu as pltpu

LN_EPS = 1e-5  # nn.LayerNorm default


# ----------------------------- in-kernel helpers -----------------------------

def _layernorm(x, gamma, beta):
    mu = jnp.mean(x, axis=-1, keepdims=True)
    var = jnp.mean(jnp.square(x - mu), axis=-1, keepdims=True)
    return (x - mu) * lax.rsqrt(var + LN_EPS) * gamma + beta


def _gelu_tanh(x):
    # TODO(synk): PyTorch nn.GELU() default is the exact erf-based GELU; erf has
    # no reliable Mosaic lowering, so we use the tanh approximation (~1e-3 diff).
    c = jnp.float32(0.7978845608028654)  # sqrt(2/pi)
    return 0.5 * x * (1.0 + jnp.tanh(c * (x + 0.044715 * x * x * x)))


# --------------------------------- kernel ------------------------------------

def transformer_kernel(x_ref, wqkv_ref, wo_ref, w1_ref, w2_ref, bvec_ref, b1_ref,
                       o_ref, xs_ref, *, batch, seq, heads, dim_head):
    """One grid step = one transformer layer applied to ALL B*N rows.

    x_ref    : (B*N, D)            input activation (fetched once; index const)
    wqkv_ref : (1, D, 3*inner)     bf16, [wq*scale | wk | wv] columns
    wo_ref   : (1, inner, D)       bf16
    w1_ref   : (1, D, mlp)         bf16
    w2_ref   : (1, mlp, D)         bf16
    bvec_ref : (1, 6, D)           f32 rows: ln1g, ln1b, b_out, ln2g, ln2b, b2
    b1_ref   : (1, 1, mlp)         f32
    o_ref    : (B*N, D)            written only at the last layer
    xs_ref   : (B*N, D) f32 VMEM   residual stream, resident across all layers
    """
    l = pl.program_id(0)
    inner = heads * dim_head
    bn = batch * seq

    @pl.when(l == 0)
    def _():
        xs_ref[...] = x_ref[...].astype(jnp.float32)

    x = xs_ref[...]                                           # (B*N, D) f32

    bvec = bvec_ref[0]                                        # (6, D) f32
    ln1g, ln1b = bvec[0:1, :], bvec[1:2, :]
    b_out = bvec[2:3, :]
    ln2g, ln2b = bvec[3:4, :], bvec[4:5, :]
    b2 = bvec[5:6, :]
    b1 = b1_ref[0]                                            # (1, mlp) f32

    # ---- attention block: LN -> fused QKV -> per-head scores -> out proj ----
    xn = _layernorm(x, ln1g, ln1b)                            # (B*N, D) f32
    qkv = jnp.dot(xn.astype(jnp.bfloat16), wqkv_ref[0],
                  preferred_element_type=jnp.float32)         # (B*N, 3*inner)

    q = qkv[:, 0 * inner:1 * inner]                           # scale folded in
    k = qkv[:, 1 * inner:2 * inner]
    v = qkv[:, 2 * inner:3 * inner]

    # Per-head N x N score matmuls, batched over B with a leading batch dim.
    ctx_heads = []
    for h in range(heads):
        lo = h * dim_head
        hi = lo + dim_head
        qh = q[:, lo:hi].reshape(batch, seq, dim_head)
        kh = k[:, lo:hi].reshape(batch, seq, dim_head)
        vh = v[:, lo:hi].reshape(batch, seq, dim_head)

        s = jnp.einsum("bqd,bkd->bqk",
                       qh.astype(jnp.bfloat16), kh.astype(jnp.bfloat16),
                       preferred_element_type=jnp.float32)    # (B, N, N)
        s = s - jnp.max(s, axis=-1, keepdims=True)
        e = jnp.exp(s)
        p = e * pl.reciprocal(jnp.sum(e, axis=-1, keepdims=True), approx=True)

        ctx = jnp.einsum("bqk,bkd->bqd",
                         p.astype(jnp.bfloat16), vh.astype(jnp.bfloat16),
                         preferred_element_type=jnp.float32)  # (B, N, dh)
        ctx_heads.append(ctx.reshape(bn, dim_head))

    ctx_all = jnp.concatenate(ctx_heads, axis=-1)             # (B*N, inner)

    attn_out = jnp.dot(ctx_all.astype(jnp.bfloat16), wo_ref[0],
                       preferred_element_type=jnp.float32) + b_out
    x = x + attn_out                                          # residual

    # ---- feed-forward block: LN -> Linear -> GELU -> Linear -> residual -----
    xn2 = _layernorm(x, ln2g, ln2b)
    h1 = jnp.dot(xn2.astype(jnp.bfloat16), w1_ref[0],
                 preferred_element_type=jnp.float32) + b1
    h1 = _gelu_tanh(h1)
    ff = jnp.dot(h1.astype(jnp.bfloat16), w2_ref[0],
                 preferred_element_type=jnp.float32) + b2
    x = x + ff                                                # residual

    xs_ref[...] = x

    @pl.when(l == pl.num_programs(0) - 1)
    def _():
        o_ref[...] = x.astype(o_ref.dtype)


# ------------------------------ param packing ---------------------------------

def pack_transformer_params(layers, heads, dim_head, weight_dtype=jnp.bfloat16):
    """Stack per-layer params along a leading depth axis in kernel layout.

    - wqkv: (depth, D, 3*inner)  [wq*scale | wk | wv] columns, bf16
    - wo  : (depth, inner, D)    bf16
    - w1  : (depth, D, mlp)      bf16
    - w2  : (depth, mlp, D)      bf16
    - bvec: (depth, 6, D)        f32 rows [ln1g, ln1b, b_out, ln2g, ln2b, b2]
    - b1  : (depth, 1, mlp)      f32
    """
    _, f0 = layers[0]
    mlp = f0["w1"].shape[1]
    scale = float(dim_head) ** -0.5

    wqkv = jnp.stack([
        jnp.concatenate([a["wq"] * scale, a["wk"], a["wv"]], axis=1)
        for a, _ in layers]).astype(weight_dtype)
    wo = jnp.stack([a["w_out"] for a, _ in layers]).astype(weight_dtype)
    w1 = jnp.stack([f["w1"] for _, f in layers]).astype(weight_dtype)
    w2 = jnp.stack([f["w2"] for _, f in layers]).astype(weight_dtype)
    bvec = jnp.stack([
        jnp.stack([a["ln_g"], a["ln_b"], a["b_out"], f["ln_g"], f["ln_b"], f["b2"]])
        for a, f in layers]).astype(jnp.float32)
    b1 = jnp.stack([f["b1"].reshape(1, mlp) for _, f in layers]).astype(jnp.float32)

    return {"wqkv": wqkv, "wo": wo, "w1": w1, "w2": w2, "bvec": bvec, "b1": b1}


# --------------------------------- wrapper -------------------------------------

def transformer_forward(x, layers, heads, dim_head):
    B, N, D = x.shape
    depth = len(layers)
    inner = heads * dim_head
    pk = pack_transformer_params(layers, heads, dim_head)
    mlp = pk["w1"].shape[-1]
    BN = B * N

    x2 = x.reshape(BN, D)   # fold batch into the row/M dimension

    def weight_spec(arr):
        nd = arr.ndim

        def idx(l, nd=nd):
            return (l,) + (0,) * (nd - 1)

        return pl.BlockSpec((1,) + tuple(arr.shape[1:]), idx)

    # Activation & output: block index constant across the depth axis =>
    # fetched once / flushed once.  Depth MUST stay a single sequential axis.
    act_spec = pl.BlockSpec((BN, D), lambda l: (0, 0))

    order = ["wqkv", "wo", "w1", "w2", "bvec", "b1"]

    flops_layer = (2 * BN * D * 3 * inner          # fused QKV projection
                   + 2 * B * heads * N * N * dim_head * 2   # QK^T + attn@V
                   + 2 * BN * inner * D            # output projection
                   + 2 * BN * D * mlp * 2)         # FFN matmuls
    transc_layer = B * heads * N * N + B * heads * N + BN * mlp + 2 * BN
    weight_bytes = sum(int(np.prod(pk[k].shape)) * pk[k].dtype.itemsize
                       for k in order)
    cost = pl.CostEstimate(
        flops=int(depth * flops_layer),
        transcendentals=int(depth * transc_layer),
        bytes_accessed=int(2 * BN * D * 4 + weight_bytes))

    kern = functools.partial(transformer_kernel,
                             batch=B, seq=N, heads=heads, dim_head=dim_head)

    out2 = pl.pallas_call(
        kern,
        out_shape=jax.ShapeDtypeStruct((BN, D), x.dtype),
        grid=(depth,),
        in_specs=[act_spec] + [weight_spec(pk[k]) for k in order],
        out_specs=act_spec,
        scratch_shapes=[pltpu.VMEM((BN, D), jnp.float32)],
        compiler_params=pltpu.CompilerParams(
            dimension_semantics=("arbitrary",),
            # Actual usage here is tiny; raise toward 64-100 MiB on v6e when
            # scaling block sizes (v5e scoped default is only 16 MiB).
            vmem_limit_bytes=64 * 1024 * 1024),
        cost_estimate=cost,
    )(x2, *[pk[k] for k in order])

    return out2.reshape(B, N, D)


# ------------------------------ parameter init ---------------------------------

def init_transformer_params(key, dim, depth, heads, dim_head, mlp_dim):
    inner = heads * dim_head
    layers = []
    for l in range(depth):
        ks = jax.random.split(jax.random.fold_in(key, l), 9)
        attn_p = {
            "ln_g": jnp.ones((dim,), jnp.float32),
            "ln_b": jnp.zeros((dim,), jnp.float32),
            # Stored pre-transposed: y = x @ W   (PyTorch Linear: y = x @ W^T).
            "wq": 0.05 * jax.random.normal(ks[0], (dim, inner), jnp.float32),
            "wk": 0.05 * jax.random.normal(ks[1], (dim, inner), jnp.float32),
            "wv": 0.05 * jax.random.normal(ks[2], (dim, inner), jnp.float32),
            "w_out": 0.05 * jax.random.normal(ks[3], (inner, dim), jnp.float32),
            "b_out": 0.05 * jax.random.normal(ks[4], (dim,), jnp.float32),
        }
        ff_p = {
            "ln_g": jnp.ones((dim,), jnp.float32),
            "ln_b": jnp.zeros((dim,), jnp.float32),
            "w1": 0.05 * jax.random.normal(ks[5], (dim, mlp_dim), jnp.float32),
            "b1": 0.05 * jax.random.normal(ks[6], (mlp_dim,), jnp.float32),
            "w2": 0.05 * jax.random.normal(ks[7], (mlp_dim, dim), jnp.float32),
            "b2": 0.05 * jax.random.normal(ks[8], (dim,), jnp.float32),
        }
        layers.append((attn_p, ff_p))
    return layers


# ------------------------------ pure-JAX reference -----------------------------

def transformer_ref(x, layers, heads, dim_head):
    inner = heads * dim_head
    scale = float(dim_head) ** -0.5
    B, N, _ = x.shape
    for attn_p, ff_p in layers:
        xn = _layernorm(x, attn_p["ln_g"], attn_p["ln_b"])
        q = xn @ attn_p["wq"]
        k = xn @ attn_p["wk"]
        v = xn @ attn_p["wv"]

        def split_heads(t):
            return t.reshape(B, N, heads, dim_head).transpose(0, 2, 1, 3)

        q, k, v = map(split_heads, (q, k, v))
        dots = jnp.einsum("bhnd,bhmd->bhnm", q, k) * scale
        attn = jax.nn.softmax(dots, axis=-1)
        out = jnp.einsum("bhnm,bhmd->bhnd", attn, v)
        out = out.transpose(0, 2, 1, 3).reshape(B, N, inner)
        x = out @ attn_p["w_out"] + attn_p["b_out"] + x

        xn = _layernorm(x, ff_p["ln_g"], ff_p["ln_b"])
        h = _gelu_tanh(xn @ ff_p["w1"] + ff_p["b1"])
        x = h @ ff_p["w2"] + ff_p["b2"] + x
    return x


# ----------------------------------- main -------------------------------------

if __name__ == "__main__":
    B, N, D = 2, 8, 32           # batch, seq, dim
    DEPTH, HEADS, DIM_HEAD, MLP_DIM = 2, 4, 16, 64

    key = jax.random.PRNGKey(0)
    k_x, k_p = jax.random.split(key)
    x = jax.random.normal(k_x, (B, N, D), jnp.float32)
    layers = init_transformer_params(k_p, D, DEPTH, HEADS, DIM_HEAD, MLP_DIM)

    out = transformer_forward(x, layers, HEADS, DIM_HEAD)
    out = jax.block_until_ready(out)

    ref = transformer_ref(x, layers, HEADS, DIM_HEAD)
    # Tolerance covers bf16 weight/activation streaming (MXU-native) and the
    # approx (EUP) softmax reciprocal; reference is the pure-f32 model.
    np.testing.assert_allclose(np.asarray(out), np.asarray(ref),
                               rtol=2e-2, atol=2e-2)
    print("KERNEL_OK")
</pallas_src>

<mosaic_0001>
module attributes {stable_mosaic.version = 11 : i64} {
  func.func @transformer_kernel(%arg0: i32, %arg1: memref<16x32xf32, #tpu.memory_space<vmem>>, %arg2: memref<1x32x192xbf16, #tpu.memory_space<vmem>>, %arg3: memref<1x64x32xbf16, #tpu.memory_space<vmem>>, %arg4: memref<1x32x64xbf16, #tpu.memory_space<vmem>>, %arg5: memref<1x64x32xbf16, #tpu.memory_space<vmem>>, %arg6: memref<1x6x32xf32, #tpu.memory_space<vmem>>, %arg7: memref<1x1x64xf32, #tpu.memory_space<vmem>>, %arg8: memref<16x32xf32, #tpu.memory_space<vmem>>, %arg9: memref<16x32xf32, #tpu.memory_space<vmem>>) attributes {dimension_semantics = [#tpu.dimension_semantics<arbitrary>], iteration_bounds = array<i64: 2>, scalar_prefetch = 0 : i64, scratch_operands = 1 : i64, tpu.core_type = #tpu.core_type<tc>, window_params = [{pipeline_mode = #tpu.pipeline_mode<synchronous>, transform_indices = @transform_0, window_bounds = array<i64: 16, 32>}, {transform_indices = @transform_1, window_bounds = array<i64: 1, 32, 192>}, {transform_indices = @transform_2, window_bounds = array<i64: 1, 64, 32>}, {transform_indices = @transform_3, window_bounds = array<i64: 1, 32, 64>}, {transform_indices = @transform_4, window_bounds = array<i64: 1, 64, 32>}, {transform_indices = @transform_5, window_bounds = array<i64: 1, 6, 32>}, {transform_indices = @transform_6, window_bounds = array<i64: 1, 1, 64>}, {pipeline_mode = #tpu.pipeline_mode<synchronous>, transform_indices = @transform_7, window_bounds = array<i64: 16, 32>}]} {
    %c0_i32 = arith.constant 0 : i32
    %0 = arith.cmpi eq, %arg0, %c0_i32 : i32
    %1 = arith.extui %0 : i1 to i32
    %c0_i32_0 = arith.constant 0 : i32
    %2 = arith.cmpi ne, %1, %c0_i32_0 : i32
    scf.if %2 {
      %c0_56 = arith.constant 0 : index
      %c0_57 = arith.constant 0 : index
      %195 = vector.load %arg1[%c0_56, %c0_57] : memref<16x32xf32, #tpu.memory_space<vmem>>, vector<16x32xf32>
      %c0_58 = arith.constant 0 : index
      %c0_59 = arith.constant 0 : index
      %196 = vector.load %arg9[%c0_58, %c0_59] : memref<16x32xf32, #tpu.memory_space<vmem>>, vector<16x32xf32>
      tpu.vector_store %arg9[%c0_58, %c0_59], %195 {strides = array<i32>} : memref<16x32xf32, #tpu.memory_space<vmem>>, vector<16x32xf32>,
    } else {
    }
    %c0 = arith.constant 0 : index
    %c0_1 = arith.constant 0 : index
    %3 = vector.load %arg9[%c0, %c0_1] : memref<16x32xf32, #tpu.memory_space<vmem>>, vector<16x32xf32>
    %c0_2 = arith.constant 0 : index
    %c0_3 = arith.constant 0 : index
    %c0_4 = arith.constant 0 : index
    %4 = vector.load %arg6[%c0_2, %c0_3, %c0_4] : memref<1x6x32xf32, #tpu.memory_space<vmem>>, vector<1x6x32xf32>
    %5 = vector.shape_cast %4 : vector<1x6x32xf32> to vector<6x32xf32>
    %6 = vector.extract_strided_slice %5 {offsets = [0, 0], sizes = [1, 32], strides = [1, 1]} : vector<6x32xf32> to vector<1x32xf32>
    %7 = vector.extract_strided_slice %5 {offsets = [1, 0], sizes = [1, 32], strides = [1, 1]} : vector<6x32xf32> to vector<1x32xf32>
    %8 = vector.extract_strided_slice %5 {offsets = [2, 0], sizes = [1, 32], strides = [1, 1]} : vector<6x32xf32> to vector<1x32xf32>
    %9 = vector.extract_strided_slice %5 {offsets = [3, 0], sizes = [1, 32], strides = [1, 1]} : vector<6x32xf32> to vector<1x32xf32>
    %10 = vector.extract_strided_slice %5 {offsets = [4, 0], sizes = [1, 32], strides = [1, 1]} : vector<6x32xf32> to vector<1x32xf32>
    %11 = vector.extract_strided_slice %5 {offsets = [5, 0], sizes = [1, 32], strides = [1, 1]} : vector<6x32xf32> to vector<1x32xf32>
    %c0_5 = arith.constant 0 : index
    %c0_6 = arith.constant 0 : index
    %c0_7 = arith.constant 0 : index
    %12 = vector.load %arg7[%c0_5, %c0_6, %c0_7] : memref<1x1x64xf32, #tpu.memory_space<vmem>>, vector<1x1x64xf32>
    %13 = vector.shape_cast %12 : vector<1x1x64xf32> to vector<1x64xf32>
    %cst = arith.constant dense<0.000000e+00> : vector<16xf32>
    %14 = vector.multi_reduction <add>, %3, %cst [1] : vector<16x32xf32> to vector<16xf32>
    %15 = vector.shape_cast %14 : vector<16xf32> to vector<16x1xf32>
    %cst_8 = arith.constant 3.200000e+01 : f32
    %16 = vector.broadcast %cst_8 : f32 to vector<16x1xf32>
    %17 = arith.divf %15, %16 : vector<16x1xf32>
    %18 = vector.broadcast %17 : vector<16x1xf32> to vector<16x32xf32>
    %19 = arith.subf %3, %18 : vector<16x32xf32>
    %20 = arith.mulf %19, %19 : vector<16x32xf32>
    %cst_9 = arith.constant dense<0.000000e+00> : vector<16xf32>
    %21 = vector.multi_reduction <add>, %20, %cst_9 [1] : vector<16x32xf32> to vector<16xf32>
    %22 = vector.shape_cast %21 : vector<16xf32> to vector<16x1xf32>
    %cst_10 = arith.constant 3.200000e+01 : f32
    %23 = vector.broadcast %cst_10 : f32 to vector<16x1xf32>
    %24 = arith.divf %22, %23 : vector<16x1xf32>
    %25 = vector.broadcast %17 : vector<16x1xf32> to vector<16x32xf32>
    %26 = arith.subf %3, %25 : vector<16x32xf32>
    %cst_11 = arith.constant 9.99999974E-6 : f32
    %27 = vector.broadcast %cst_11 : f32 to vector<16x1xf32>
    %28 = arith.addf %24, %27 : vector<16x1xf32>
    %29 = math.rsqrt %28 : vector<16x1xf32>
    %30 = vector.broadcast %29 : vector<16x1xf32> to vector<16x32xf32>
    %31 = arith.mulf %26, %30 : vector<16x32xf32>
    %32 = vector.broadcast %6 : vector<1x32xf32> to vector<16x32xf32>
    %33 = arith.mulf %31, %32 : vector<16x32xf32>
    %34 = vector.broadcast %7 : vector<1x32xf32> to vector<16x32xf32>
    %35 = arith.addf %33, %34 : vector<16x32xf32>
    %36 = arith.truncf %35 : vector<16x32xf32> to vector<16x32xbf16>
    %c0_12 = arith.constant 0 : index
    %c0_13 = arith.constant 0 : index
    %c0_14 = arith.constant 0 : index
    %37 = vector.load %arg2[%c0_12, %c0_13, %c0_14] : memref<1x32x192xbf16, #tpu.memory_space<vmem>>, vector<1x32x192xbf16>
    %38 = vector.shape_cast %37 : vector<1x32x192xbf16> to vector<32x192xbf16>
    %cst_15 = arith.constant dense<0.000000e+00> : vector<16x192xf32>
    %39 = tpu.matmul %36, %38, %cst_15 {dimension_numbers = #tpu.dot_dimension_numbers<[1], [0], [0], [1], [0, 0, 1, 1], [], []>} : vector<16x32xbf16>, vector<32x192xbf16>, vector<16x192xf32> -> vector<16x192xf32>
    %40 = vector.extract_strided_slice %39 {offsets = [0, 0], sizes = [16, 64], strides = [1, 1]} : vector<16x192xf32> to vector<16x64xf32>
    %41 = vector.extract_strided_slice %39 {offsets = [0, 64], sizes = [16, 64], strides = [1, 1]} : vector<16x192xf32> to vector<16x64xf32>
    %42 = vector.extract_strided_slice %39 {offsets = [0, 128], sizes = [16, 64], strides = [1, 1]} : vector<16x192xf32> to vector<16x64xf32>
    %43 = vector.extract_strided_slice %40 {offsets = [0, 0], sizes = [16, 16], strides = [1, 1]} : vector<16x64xf32> to vector<16x16xf32>
    %44 = vector.shape_cast %43 : vector<16x16xf32> to vector<2x8x16xf32>
    %45 = vector.extract_strided_slice %41 {offsets = [0, 0], sizes = [16, 16], strides = [1, 1]} : vector<16x64xf32> to vector<16x16xf32>
    %46 = vector.shape_cast %45 : vector<16x16xf32> to vector<2x8x16xf32>
    %47 = vector.extract_strided_slice %42 {offsets = [0, 0], sizes = [16, 16], strides = [1, 1]} : vector<16x64xf32> to vector<16x16xf32>
    %48 = vector.shape_cast %47 : vector<16x16xf32> to vector<2x8x16xf32>
    %49 = arith.truncf %44 : vector<2x8x16xf32> to vector<2x8x16xbf16>
    %50 = arith.truncf %46 : vector<2x8x16xf32> to vector<2x8x16xbf16>
    "tpu.trace_start"() <{level = 10 : i32, message = "bqd,bkd->bqk"}> : () -> ()
    %cst_16 = arith.constant dense<0.000000e+00> : vector<2x8x8xf32>
    %51 = tpu.matmul %49, %50, %cst_16 {dimension_numbers = #tpu.dot_dimension_numbers<[2], [2], [1], [1], [0, 0, 0, 1, 1, 1], [0], [0]>} : vector<2x8x16xbf16>, vector<2x8x16xbf16>, vector<2x8x8xf32> -> vector<2x8x8xf32>
    "tpu.trace_stop"() : () -> ()
    %cst_17 = arith.constant dense<0xFF800000> : vector<2x8xf32>
    %52 = vector.multi_reduction <maximumf>, %51, %cst_17 [2] : vector<2x8x8xf32> to vector<2x8xf32>
    %53 = vector.shape_cast %52 : vector<2x8xf32> to vector<2x8x1xf32>
    %54 = vector.broadcast %53 : vector<2x8x1xf32> to vector<2x8x8xf32>
    %55 = arith.subf %51, %54 : vector<2x8x8xf32>
    %56 = math.exp %55 : vector<2x8x8xf32>
    %cst_18 = arith.constant dense<0.000000e+00> : vector<2x8xf32>
    %57 = vector.multi_reduction <add>, %56, %cst_18 [2] : vector<2x8x8xf32> to vector<2x8xf32>
    %58 = vector.shape_cast %57 : vector<2x8xf32> to vector<2x8x1xf32>
    %59 = tpu.reciprocal %58 {approx = true} : vector<2x8x1xf32> -> vector<2x8x1xf32>
    %60 = vector.broadcast %59 : vector<2x8x1xf32> to vector<2x8x8xf32>
    %61 = arith.mulf %56, %60 : vector<2x8x8xf32>
    %62 = arith.truncf %61 : vector<2x8x8xf32> to vector<2x8x8xbf16>
    %63 = arith.truncf %48 : vector<2x8x16xf32> to vector<2x8x16xbf16>
    "tpu.trace_start"() <{level = 10 : i32, message = "bqk,bkd->bqd"}> : () -> ()
    %cst_19 = arith.constant dense<0.000000e+00> : vector<2x8x16xf32>
    %64 = tpu.matmul %62, %63, %cst_19 {dimension_numbers = #tpu.dot_dimension_numbers<[2], [1], [1], [2], [0, 0, 0, 1, 1, 2], [0], [0]>} : vector<2x8x8xbf16>, vector<2x8x16xbf16>, vector<2x8x16xf32> -> vector<2x8x16xf32>
    "tpu.trace_stop"() : () -> ()
    %65 = vector.shape_cast %64 : vector<2x8x16xf32> to vector<16x16xf32>
    %66 = vector.extract_strided_slice %40 {offsets = [0, 16], sizes = [16, 16], strides = [1, 1]} : vector<16x64xf32> to vector<16x16xf32>
    %67 = vector.shape_cast %66 : vector<16x16xf32> to vector<2x8x16xf32>
    %68 = vector.extract_strided_slice %41 {offsets = [0, 16], sizes = [16, 16], strides = [1, 1]} : vector<16x64xf32> to vector<16x16xf32>
    %69 = vector.shape_cast %68 : vector<16x16xf32> to vector<2x8x16xf32>
    %70 = vector.extract_strided_slice %42 {offsets = [0, 16], sizes = [16, 16], strides = [1, 1]} : vector<16x64xf32> to vector<16x16xf32>
    %71 = vector.shape_cast %70 : vector<16x16xf32> to vector<2x8x16xf32>
    %72 = arith.truncf %67 : vector<2x8x16xf32> to vector<2x8x16xbf16>
    %73 = arith.truncf %69 : vector<2x8x16xf32> to vector<2x8x16xbf16>
    "tpu.trace_start"() <{level = 10 : i32, message = "bqd,bkd->bqk"}> : () -> ()
    %cst_20 = arith.constant dense<0.000000e+00> : vector<2x8x8xf32>
    %74 = tpu.matmul %72, %73, %cst_20 {dimension_numbers = #tpu.dot_dimension_numbers<[2], [2], [1], [1], [0, 0, 0, 1, 1, 1], [0], [0]>} : vector<2x8x16xbf16>, vector<2x8x16xbf16>, vector<2x8x8xf32> -> vector<2x8x8xf32>
    "tpu.trace_stop"() : () -> ()
    %cst_21 = arith.constant dense<0xFF800000> : vector<2x8xf32>
    %75 = vector.multi_reduction <maximumf>, %74, %cst_21 [2] : vector<2x8x8xf32> to vector<2x8xf32>
    %76 = vector.shape_cast %75 : vector<2x8xf32> to vector<2x8x1xf32>
    %77 = vector.broadcast %76 : vector<2x8x1xf32> to vector<2x8x8xf32>
    %78 = arith.subf %74, %77 : vector<2x8x8xf32>
    %79 = math.exp %78 : vector<2x8x8xf32>
    %cst_22 = arith.constant dense<0.000000e+00> : vector<2x8xf32>
    %80 = vector.multi_reduction <add>, %79, %cst_22 [2] : vector<2x8x8xf32> to vector<2x8xf32>
    %81 = vector.shape_cast %80 : vector<2x8xf32> to vector<2x8x1xf32>
    %82 = tpu.reciprocal %81 {approx = true} : vector<2x8x1xf32> -> vector<2x8x1xf32>
    %83 = vector.broadcast %82 : vector<2x8x1xf32> to vector<2x8x8xf32>
    %84 = arith.mulf %79, %83 : vector<2x8x8xf32>
    %85 = arith.truncf %84 : vector<2x8x8xf32> to vector<2x8x8xbf16>
    %86 = arith.truncf %71 : vector<2x8x16xf32> to vector<2x8x16xbf16>
    "tpu.trace_start"() <{level = 10 : i32, message = "bqk,bkd->bqd"}> : () -> ()
    %cst_23 = arith.constant dense<0.000000e+00> : vector<2x8x16xf32>
    %87 = tpu.matmul %85, %86, %cst_23 {dimension_numbers = #tpu.dot_dimension_numbers<[2], [1], [1], [2], [0, 0, 0, 1, 1, 2], [0], [0]>} : vector<2x8x8xbf16>, vector<2x8x16xbf16>, vector<2x8x16xf32> -> vector<2x8x16xf32>
    "tpu.trace_stop"() : () -> ()
    %88 = vector.shape_cast %87 : vector<2x8x16xf32> to vector<16x16xf32>
    %89 = vector.extract_strided_slice %40 {offsets = [0, 32], sizes = [16, 16], strides = [1, 1]} : vector<16x64xf32> to vector<16x16xf32>
    %90 = vector.shape_cast %89 : vector<16x16xf32> to vector<2x8x16xf32>
    %91 = vector.extract_strided_slice %41 {offsets = [0, 32], sizes = [16, 16], strides = [1, 1]} : vector<16x64xf32> to vector<16x16xf32>
    %92 = vector.shape_cast %91 : vector<16x16xf32> to vector<2x8x16xf32>
    %93 = vector.extract_strided_slice %42 {offsets = [0, 32], sizes = [16, 16], strides = [1, 1]} : vector<16x64xf32> to vector<16x16xf32>
    %94 = vector.shape_cast %93 : vector<16x16xf32> to vector<2x8x16xf32>
    %95 = arith.truncf %90 : vector<2x8x16xf32> to vector<2x8x16xbf16>
    %96 = arith.truncf %92 : vector<2x8x16xf32> to vector<2x8x16xbf16>
    "tpu.trace_start"() <{level = 10 : i32, message = "bqd,bkd->bqk"}> : () -> ()
    %cst_24 = arith.constant dense<0.000000e+00> : vector<2x8x8xf32>
    %97 = tpu.matmul %95, %96, %cst_24 {dimension_numbers = #tpu.dot_dimension_numbers<[2], [2], [1], [1], [0, 0, 0, 1, 1, 1], [0], [0]>} : vector<2x8x16xbf16>, vector<2x8x16xbf16>, vector<2x8x8xf32> -> vector<2x8x8xf32>
    "tpu.trace_stop"() : () -> ()
    %cst_25 = arith.constant dense<0xFF800000> : vector<2x8xf32>
    %98 = vector.multi_reduction <maximumf>, %97, %cst_25 [2] : vector<2x8x8xf32> to vector<2x8xf32>
    %99 = vector.shape_cast %98 : vector<2x8xf32> to vector<2x8x1xf32>
    %100 = vector.broadcast %99 : vector<2x8x1xf32> to vector<2x8x8xf32>
    %101 = arith.subf %97, %100 : vector<2x8x8xf32>
    %102 = math.exp %101 : vector<2x8x8xf32>
    %cst_26 = arith.constant dense<0.000000e+00> : vector<2x8xf32>
    %103 = vector.multi_reduction <add>, %102, %cst_26 [2] : vector<2x8x8xf32> to vector<2x8xf32>
    %104 = vector.shape_cast %103 : vector<2x8xf32> to vector<2x8x1xf32>
    %105 = tpu.reciprocal %104 {approx = true} : vector<2x8x1xf32> -> vector<2x8x1xf32>
    %106 = vector.broadcast %105 : vector<2x8x1xf32> to vector<2x8x8xf32>
    %107 = arith.mulf %102, %106 : vector<2x8x8xf32>
    %108 = arith.truncf %107 : vector<2x8x8xf32> to vector<2x8x8xbf16>
    %109 = arith.truncf %94 : vector<2x8x16xf32> to vector<2x8x16xbf16>
    "tpu.trace_start"() <{level = 10 : i32, message = "bqk,bkd->bqd"}> : () -> ()
    %cst_27 = arith.constant dense<0.000000e+00> : vector<2x8x16xf32>
    %110 = tpu.matmul %108, %109, %cst_27 {dimension_numbers = #tpu.dot_dimension_numbers<[2], [1], [1], [2], [0, 0, 0, 1, 1, 2], [0], [0]>} : vector<2x8x8xbf16>, vector<2x8x16xbf16>, vector<2x8x16xf32> -> vector<2x8x16xf32>
    "tpu.trace_stop"() : () -> ()
    %111 = vector.shape_cast %110 : vector<2x8x16xf32> to vector<16x16xf32>
    %112 = vector.extract_strided_slice %40 {offsets = [0, 48], sizes = [16, 16], strides = [1, 1]} : vector<16x64xf32> to vector<16x16xf32>
    %113 = vector.shape_cast %112 : vector<16x16xf32> to vector<2x8x16xf32>
    %114 = vector.extract_strided_slice %41 {offsets = [0, 48], sizes = [16, 16], strides = [1, 1]} : vector<16x64xf32> to vector<16x16xf32>
    %115 = vector.shape_cast %114 : vector<16x16xf32> to vector<2x8x16xf32>
    %116 = vector.extract_strided_slice %42 {offsets = [0, 48], sizes = [16, 16], strides = [1, 1]} : vector<16x64xf32> to vector<16x16xf32>
    %117 = vector.shape_cast %116 : vector<16x16xf32> to vector<2x8x16xf32>
    %118 = arith.truncf %113 : vector<2x8x16xf32> to vector<2x8x16xbf16>
    %119 = arith.truncf %115 : vector<2x8x16xf32> to vector<2x8x16xbf16>
    "tpu.trace_start"() <{level = 10 : i32, message = "bqd,bkd->bqk"}> : () -> ()
    %cst_28 = arith.constant dense<0.000000e+00> : vector<2x8x8xf32>
    %120 = tpu.matmul %118, %119, %cst_28 {dimension_numbers = #tpu.dot_dimension_numbers<[2], [2], [1], [1], [0, 0, 0, 1, 1, 1], [0], [0]>} : vector<2x8x16xbf16>, vector<2x8x16xbf16>, vector<2x8x8xf32> -> vector<2x8x8xf32>
    "tpu.trace_stop"() : () -> ()
    %cst_29 = arith.constant dense<0xFF800000> : vector<2x8xf32>
    %121 = vector.multi_reduction <maximumf>, %120, %cst_29 [2] : vector<2x8x8xf32> to vector<2x8xf32>
    %122 = vector.shape_cast %121 : vector<2x8xf32> to vector<2x8x1xf32>
    %123 = vector.broadcast %122 : vector<2x8x1xf32> to vector<2x8x8xf32>
    %124 = arith.subf %120, %123 : vector<2x8x8xf32>
    %125 = math.exp %124 : vector<2x8x8xf32>
    %cst_30 = arith.constant dense<0.000000e+00> : vector<2x8xf32>
    %126 = vector.multi_reduction <add>, %125, %cst_30 [2] : vector<2x8x8xf32> to vector<2x8xf32>
    %127 = vector.shape_cast %126 : vector<2x8xf32> to vector<2x8x1xf32>
    %128 = tpu.reciprocal %127 {approx = true} : vector<2x8x1xf32> -> vector<2x8x1xf32>
    %129 = vector.broadcast %128 : vector<2x8x1xf32> to vector<2x8x8xf32>
    %130 = arith.mulf %125, %129 : vector<2x8x8xf32>
    %131 = arith.truncf %130 : vector<2x8x8xf32> to vector<2x8x8xbf16>
    %132 = arith.truncf %117 : vector<2x8x16xf32> to vector<2x8x16xbf16>
    "tpu.trace_start"() <{level = 10 : i32, message = "bqk,bkd->bqd"}> : () -> ()
    %cst_31 = arith.constant dense<0.000000e+00> : vector<2x8x16xf32>
    %133 = tpu.matmul %131, %132, %cst_31 {dimension_numbers = #tpu.dot_dimension_numbers<[2], [1], [1], [2], [0, 0, 0, 1, 1, 2], [0], [0]>} : vector<2x8x8xbf16>, vector<2x8x16xbf16>, vector<2x8x16xf32> -> vector<2x8x16xf32>
    "tpu.trace_stop"() : () -> ()
    %134 = vector.shape_cast %133 : vector<2x8x16xf32> to vector<16x16xf32>
    %135 = tpu.concatenate %65, %88, %111, %134 in 1 : vector<16x16xf32>, vector<16x16xf32>, vector<16x16xf32>, vector<16x16xf32> -> vector<16x64xf32>
    %136 = arith.truncf %135 : vector<16x64xf32> to vector<16x64xbf16>
    %c0_32 = arith.constant 0 : index
    %c0_33 = arith.constant 0 : index
    %c0_34 = arith.constant 0 : index
    %137 = vector.load %arg3[%c0_32, %c0_33, %c0_34] : memref<1x64x32xbf16, #tpu.memory_space<vmem>>, vector<1x64x32xbf16>
    %138 = vector.shape_cast %137 : vector<1x64x32xbf16> to vector<64x32xbf16>
    %cst_35 = arith.constant dense<0.000000e+00> : vector<16x32xf32>
    %139 = tpu.matmul %136, %138, %cst_35 {dimension_numbers = #tpu.dot_dimension_numbers<[1], [0], [0], [1], [0, 0, 1, 1], [], []>} : vector<16x64xbf16>, vector<64x32xbf16>, vector<16x32xf32> -> vector<16x32xf32>
    %140 = vector.broadcast %8 : vector<1x32xf32> to vector<16x32xf32>
    %141 = arith.addf %139, %140 : vector<16x32xf32>
    %142 = arith.addf %3, %141 : vector<16x32xf32>
    %cst_36 = arith.constant dense<0.000000e+00> : vector<16xf32>
    %143 = vector.multi_reduction <add>, %142, %cst_36 [1] : vector<16x32xf32> to vector<16xf32>
    %144 = vector.shape_cast %143 : vector<16xf32> to vector<16x1xf32>
    %cst_37 = arith.constant 3.200000e+01 : f32
    %145 = vector.broadcast %cst_37 : f32 to vector<16x1xf32>
    %146 = arith.divf %144, %145 : vector<16x1xf32>
    %147 = vector.broadcast %146 : vector<16x1xf32> to vector<16x32xf32>
    %148 = arith.subf %142, %147 : vector<16x32xf32>
    %149 = arith.mulf %148, %148 : vector<16x32xf32>
    %cst_38 = arith.constant dense<0.000000e+00> : vector<16xf32>
    %150 = vector.multi_reduction <add>, %149, %cst_38 [1] : vector<16x32xf32> to vector<16xf32>
    %151 = vector.shape_cast %150 : vector<16xf32> to vector<16x1xf32>
    %cst_39 = arith.constant 3.200000e+01 : f32
    %152 = vector.broadcast %cst_39 : f32 to vector<16x1xf32>
    %153 = arith.divf %151, %152 : vector<16x1xf32>
    %154 = vector.broadcast %146 : vector<16x1xf32> to vector<16x32xf32>
    %155 = arith.subf %142, %154 : vector<16x32xf32>
    %cst_40 = arith.constant 9.99999974E-6 : f32
    %156 = vector.broadcast %cst_40 : f32 to vector<16x1xf32>
    %157 = arith.addf %153, %156 : vector<16x1xf32>
    %158 = math.rsqrt %157 : vector<16x1xf32>
    %159 = vector.broadcast %158 : vector<16x1xf32> to vector<16x32xf32>
    %160 = arith.mulf %155, %159 : vector<16x32xf32>
    %161 = vector.broadcast %9 : vector<1x32xf32> to vector<16x32xf32>
    %162 = arith.mulf %160, %161 : vector<16x32xf32>
    %163 = vector.broadcast %10 : vector<1x32xf32> to vector<16x32xf32>
    %164 = arith.addf %162, %163 : vector<16x32xf32>
    %165 = arith.truncf %164 : vector<16x32xf32> to vector<16x32xbf16>
    %c0_41 = arith.constant 0 : index
    %c0_42 = arith.constant 0 : index
    %c0_43 = arith.constant 0 : index
    %166 = vector.load %arg4[%c0_41, %c0_42, %c0_43] : memref<1x32x64xbf16, #tpu.memory_space<vmem>>, vector<1x32x64xbf16>
    %167 = vector.shape_cast %166 : vector<1x32x64xbf16> to vector<32x64xbf16>
    %cst_44 = arith.constant dense<0.000000e+00> : vector<16x64xf32>
    %168 = tpu.matmul %165, %167, %cst_44 {dimension_numbers = #tpu.dot_dimension_numbers<[1], [0], [0], [1], [0, 0, 1, 1], [], []>} : vector<16x32xbf16>, vector<32x64xbf16>, vector<16x64xf32> -> vector<16x64xf32>
    %169 = vector.broadcast %13 : vector<1x64xf32> to vector<16x64xf32>
    %170 = arith.addf %168, %169 : vector<16x64xf32>
    %cst_45 = arith.constant 5.000000e-01 : f32
    %171 = vector.broadcast %cst_45 : f32 to vector<16x64xf32>
    %172 = arith.mulf %171, %170 : vector<16x64xf32>
    %cst_46 = arith.constant 4.471500e-02 : f32
    %173 = vector.broadcast %cst_46 : f32 to vector<16x64xf32>
    %174 = arith.mulf %173, %170 : vector<16x64xf32>
    %175 = arith.mulf %174, %170 : vector<16x64xf32>
    %176 = arith.mulf %175, %170 : vector<16x64xf32>
    %177 = arith.addf %170, %176 : vector<16x64xf32>
    %cst_47 = arith.constant 0.797884583 : f32
    %178 = vector.broadcast %cst_47 : f32 to vector<16x64xf32>
    %179 = arith.mulf %178, %177 : vector<16x64xf32>
    %180 = math.tanh %179 : vector<16x64xf32>
    %cst_48 = arith.constant 1.000000e+00 : f32
    %181 = vector.broadcast %cst_48 : f32 to vector<16x64xf32>
    %182 = arith.addf %181, %180 : vector<16x64xf32>
    %183 = arith.mulf %172, %182 : vector<16x64xf32>
    %184 = arith.truncf %183 : vector<16x64xf32> to vector<16x64xbf16>
    %c0_49 = arith.constant 0 : index
    %c0_50 = arith.constant 0 : index
    %c0_51 = arith.constant 0 : index
    %185 = vector.load %arg5[%c0_49, %c0_50, %c0_51] : memref<1x64x32xbf16, #tpu.memory_space<vmem>>, vector<1x64x32xbf16>
    %186 = vector.shape_cast %185 : vector<1x64x32xbf16> to vector<64x32xbf16>
    %cst_52 = arith.constant dense<0.000000e+00> : vector<16x32xf32>
    %187 = tpu.matmul %184, %186, %cst_52 {dimension_numbers = #tpu.dot_dimension_numbers<[1], [0], [0], [1], [0, 0, 1, 1], [], []>} : vector<16x64xbf16>, vector<64x32xbf16>, vector<16x32xf32> -> vector<16x32xf32>
    %188 = vector.broadcast %11 : vector<1x32xf32> to vector<16x32xf32>
    %189 = arith.addf %187, %188 : vector<16x32xf32>
    %190 = arith.addf %142, %189 : vector<16x32xf32>
    %c0_53 = arith.constant 0 : index
    %c0_54 = arith.constant 0 : index
    %191 = vector.load %arg9[%c0_53, %c0_54] : memref<16x32xf32, #tpu.memory_space<vmem>>, vector<16x32xf32>
    tpu.vector_store %arg9[%c0_53, %c0_54], %190 {strides = array<i32>} : memref<16x32xf32, #tpu.memory_space<vmem>>, vector<16x32xf32>,
    %c1_i32 = arith.constant 1 : i32
    %192 = arith.cmpi eq, %arg0, %c1_i32 : i32
    %193 = arith.extui %192 : i1 to i32
    %c0_i32_55 = arith.constant 0 : i32
    %194 = arith.cmpi ne, %193, %c0_i32_55 : i32
    scf.if %194 {
      %c0_56 = arith.constant 0 : index
      %c0_57 = arith.constant 0 : index
      %195 = vector.load %arg8[%c0_56, %c0_57] : memref<16x32xf32, #tpu.memory_space<vmem>>, vector<16x32xf32>
      tpu.vector_store %arg8[%c0_56, %c0_57], %190 {strides = array<i32>} : memref<16x32xf32, #tpu.memory_space<vmem>>, vector<16x32xf32>,
    } else {
    }
    return
  }
  func.func @transform_0(%arg0: i32) -> (i32, i32) {
    %c0_i32 = arith.constant 0 : i32
    %c0_i32_0 = arith.constant 0 : i32
    %c0_i32_1 = arith.constant 0 : i32
    return %c0_i32, %c0_i32_0 : i32, i32
  }
  func.func @transform_1(%arg0: i32) -> (i32, i32, i32) {
    %c0_i32 = arith.constant 0 : i32
    %c0_i32_0 = arith.constant 0 : i32
    %c0_i32_1 = arith.constant 0 : i32
    return %arg0, %c0_i32, %c0_i32_0 : i32, i32, i32
  }
  func.func @transform_2(%arg0: i32) -> (i32, i32, i32) {
    %c0_i32 = arith.constant 0 : i32
    %c0_i32_0 = arith.constant 0 : i32
    %c0_i32_1 = arith.constant 0 : i32
    return %arg0, %c0_i32, %c0_i32_0 : i32, i32, i32
  }
  func.func @transform_3(%arg0: i32) -> (i32, i32, i32) {
    %c0_i32 = arith.constant 0 : i32
    %c0_i32_0 = arith.constant 0 : i32
    %c0_i32_1 = arith.constant 0 : i32
    return %arg0, %c0_i32, %c0_i32_0 : i32, i32, i32
  }
  func.func @transform_4(%arg0: i32) -> (i32, i32, i32) {
    %c0_i32 = arith.constant 0 : i32
    %c0_i32_0 = arith.constant 0 : i32
    %c0_i32_1 = arith.constant 0 : i32
    return %arg0, %c0_i32, %c0_i32_0 : i32, i32, i32
  }
  func.func @transform_5(%arg0: i32) -> (i32, i32, i32) {
    %c0_i32 = arith.constant 0 : i32
    %c0_i32_0 = arith.constant 0 : i32
    %c0_i32_1 = arith.constant 0 : i32
    return %arg0, %c0_i32, %c0_i32_0 : i32, i32, i32
  }
  func.func @transform_6(%arg0: i32) -> (i32, i32, i32) {
    %c0_i32 = arith.constant 0 : i32
    %c0_i32_0 = arith.constant 0 : i32
    %c0_i32_1 = arith.constant 0 : i32
    return %arg0, %c0_i32, %c0_i32_0 : i32, i32, i32
  }
  func.func @transform_7(%arg0: i32) -> (i32, i32) {
    %c0_i32 = arith.constant 0 : i32
    %c0_i32_0 = arith.constant 0 : i32
    %c0_i32_1 = arith.constant 0 : i32
    return %c0_i32, %c0_i32_0 : i32, i32
  }
}

</mosaic_0001>

<bundles_post_ra>
// kernel: tpu_custom_call.1
= control target key start
LH: loop header
LB: loop body
LE: loop exit
PB: predicated region body
PF: predicated region fallthrough
CT: control target
= control target key end

     0   :  { %12 = vsyncpa [#allocation4], 0  ;;  %s2220_s24 = smov 0   ;;  %s2545_s0 = inlined_call_operand.vmem [shape: f32[16,32], index: 0, kind: input, shape index: {}]   ;;  %s2546_s1 = inlined_call_operand.vmem [shape: bf16[2,32,192], index: 1, kind: input, shape index: {}]   ;;  %s2547_s2 = inlined_call_operand.vmem [shape: bf16[2,64,32], index: 2, kind: input, shape index: {}]   ;;  %s2548_s3 = inlined_call_operand.vmem [shape: bf16[2,32,64], index: 3, kind: input, shape index: {}]   ;;  %s2549_s4 = inlined_call_operand.vmem [shape: bf16[2,64,32], index: 4, kind: input, shape index: {}]   ;;  %s2550_s5 = inlined_call_operand.vmem [shape: f32[2,6,32], index: 5, kind: input, shape index: {}]   ;;  %s2551_s6 = inlined_call_operand.vmem [shape: f32[2,1,64], index: 6, kind: input, shape index: {}]   ;;  %s2552_s7 = inlined_call_operand.hbm [shape: f32[16,32], index: 7, kind: output, shape index: {}]  }
   0x1 LB: > { %s2226_s25 = sadd.s32 4294967295, %s2165_s24   ;;  %p1801_p0 = scmp.ge.s32.totalorder %s2165_s24, 1  ;;  %s2165_s24 = sphi %s2220_s24, %s18_s24  }
   0x2   : > { %p280_p1 = scmp.lt.s32.totalorder %s2165_s24, 3 }
   0x4   : > { %p281_p2 = pnand %p1801_p0, %p280_p1 }
   0x5   : > { %p329_p3 = scmp.lt.s32.totalorder (!%p281_p2), %s2226_s25, 1  ;;  %p1811_p4 = scmp.ne.s32.totalorder (!%p281_p2), %s2226_s25, 0 }
   0x6   : > { %284 = sbr.rel (%p281_p2) target bundleno = 3993 (0xf99), region = 48 }
   0xb   : > { %s2232_s26 = scalar_select %p329_p3, %s2226_s25, 1 }
   0xd   : > { %s1852_s27 = sshll.u32 %s2232_s26, 5  ;;  %s1854_s28 = sshll.u32 %s2232_s26, 4 }
   0xe   : > { %s2239_s8 = scalar_lea.vmem %s2546_s1, %s1852_s27  ;;  %s2244_s11 = scalar_lea.vmem %s2547_s2, %s1852_s27 }
   0xf   : > { %s2249_s14 = scalar_lea.vmem %s2548_s3, %s1854_s28  ;;  %s2254_s17 = scalar_lea.vmem %s2549_s4, %s1852_s27 }
  0x10   : > { %s1810_s18 = sshll.u32 %s2232_s26, 3  ;;  %s355_s21 = scalar_lea.vmem %s2551_s6, %s2232_s26 }
  0x11   : > { %s2264_s29 = scalar_lea.vmem %s2550_s5, %s1810_s18  ;;  %360 = sbr.rel (%p1811_p4) target bundleno = 24 (0x18), region = 52 }
  0x16   : > { %v361_v0 = vld [vmem:[%s2545_s0] sm:$0xff]  ;;  %vm363_vm0 = vcmask 261120   ;;  %v362_v1 = vld [vmem:[%s2545_s0 + $0x8] sm:$0xff] }
  0x17   : > { %364 = vst.msk [vmem:[#allocation2] sm:$0xff] %vm363_vm0, %v361_v0  ;;  %365 = vst.msk [vmem:[#allocation2 + $0x8] sm:$0xff] %vm363_vm0, %v362_v1 }
  0x18 PF: > { %vm370_vm1 = vcmask 261120   ;;  %v2071_v16 = vld [vmem:[%s2239_s8 + $0x14] ss:$8 sps:$4 sm:$0xff]   ;;  %v2073_v17 = vld [vmem:[%s2239_s8 + $0x10] ss:$8 sps:$4 sm:$0xff]   ;;  %v2167_v19 = vmov 0   ;;  %v398_v27 = vlaneseq }
  0x19   : > { %v2074_v18 = vld [vmem:[%s2239_s8 + $0x4] ss:$8 sps:$4 sm:$0xff]   ;;  %450 = vmatprep.subr.bf16.mxu1 %v2071_v16  ;;  %470 = vmatprep.mubr.bf16.mxu1 %v2167_v19  ;;  %v2076_v20 = vld [vmem:[%s2239_s8] ss:$8 sps:$4 sm:$0xff]   ;;  %v2168_v43 = vmov 0.0   ;;  %vm2169_vm2 = vmmov 0  }
  0x1a   : > { %451 = vmatpush1.bf16.msra.mxu1 %v2073_v17  ;;  %v2289_v28 = vshrl.u32 %v398_v27, 7  ;;  %v2293_v30 = vld [vmem:[%s2264_s29] sm:$0x3f]  ;;  %1907 = vmatprep.subr.bf16.mxu0 %v2168_v43  ;;  %s2170_s8 = smov 64   ;;  %vm486_vm3 = vcmask 130048   ;;  %vm612_vm4 = vcmask 1043456  }
  0x1b   : > { %452 = vmatprep.subr.bf16.mxu1 %v2074_v18  ;;  %1909 = vmatprep.mubr.msk.bf16.mxu0 %vm2169_vm2, %v2168_v43  ;;  %vm582_vm5 = vcmask 64512   ;;  %s2171_s10 = smov 48   ;;  %s2172_s12 = smov 112   ;;  %vm1392_vm6 = vcmask 392192   ;;  %vm1432_vm7 = vcmask 523264  }
  0x1c   : > { %v400_v29 = vsub.s32 0, %v2289_v28  ;;  %v406_v34 = vsub.s32 1, %v2289_v28  ;;  %s2173_s13 = smov 32   ;;  %s2174_s15 = smov 96  }
  0x1d   : > { %s2175_s16 = smov 16   ;;  %s2176_s18 = smov 80  }
  0x1e   : > { %v2273_v2 = vld [vmem:[#allocation2] sm:$0xff]  ;;  %v2275_v3 = vld [vmem:[#allocation2 + $0x8] sm:$0xff]  ;;  %453 = vmatpush1.bf16.msra.mxu1 %v2076_v20  ;;  %v401_v33 = vrot.slane %v2293_v30, %v400_v29  ;;  %v407_v38 = vrot.slane %v2293_v30, %v406_v34  ;;  %p1847_p5 = scmp.ne.s32.totalorder %s2226_s25, 1 }
  0x1f   : > { %v371_v4 = vsel %vm370_vm1, %v2273_v2, 0.0  ;;  %v374_v5 = vsel %vm370_vm1, %v2275_v3, 0.0  ;;  %1901 = vmatprep.subr.bf16.mxu1 %v2168_v43 }
  0x20   : > { %372 = vadd.xlane.f32.xlu0 %v371_v4 }
  0x24   : > { %375 = vadd.xlane.f32.xlu0 %v374_v5 }
  0xa9   : > { %v373_v6 = vpop.xlane.xlu0 %372 }
  0xaa   : > { %v378_v7 = vmul.f32 0.03125, %v373_v6 }
  0xac   : > { %v380_v8 = vsub.f32 %v2273_v2, %v378_v7 }
  0xad   : > { %v376_v9 = vpop.xlane.xlu0 %375 }
  0xae   : > { %v379_v10 = vmul.f32 0.03125, %v376_v9  ;;  %v382_v11 = vmul.f32 %v380_v8, %v380_v8 }
  0xb0   : > { %v381_v12 = vsub.f32 %v2275_v3, %v379_v10  ;;  %v384_v13 = vsel %vm370_vm1, %v382_v11, 0.0 }
  0xb1   : > { %385 = vadd.xlane.f32.xlu1 %v384_v13 }
  0xb2   : > { %v383_v14 = vmul.f32 %v381_v12, %v381_v12 }
  0xb4   : > { %v387_v15 = vsel %vm370_vm1, %v383_v14, 0.0 }
  0xb5   : > { %388 = vadd.xlane.f32.xlu1 %v387_v15 }
 0x13a   : > { %v386_v21 = vpop.xlane.xlu1 %385 }
 0x13b   : > { %v390_v22 = vmul.f32 0.03125, %v386_v21 }
 0x13d   : > { %v392_v23 = vadd.f32 1e-05, %v390_v22 }
 0x13e   : > { %v389_v24 = vpop.xlane.xlu1 %388 }
 0x13f   : > { %2087 = vrsqrt.f32 %v392_v23  ;;  %v391_v25 = vmul.f32 0.03125, %v389_v24 }
 0x141   : > { %v393_v26 = vadd.f32 1e-05, %v391_v25 }
 0x143   : > { %2089 = vrsqrt.f32 %v393_v26 }
 0x14c   : > { %v2088_v31 = vpop.eup %2087 }
 0x14d   : > { %v396_v32 = vmul.f32 %v2088_v31, %v380_v8 }
 0x14f   : > { %v402_v37 = vmul.f32 %v401_v33, %v396_v32 }
 0x150   : > { %v2090_v35 = vpop.eup %2089 }
 0x151   : > { %v397_v36 = vmul.f32 %v2090_v35, %v381_v12  ;;  %v408_v40 = vadd.f32 %v407_v38, %v402_v37 }
 0x153   : > { %v403_v39 = vmul.f32 %v401_v33, %v397_v36 }
 0x155   : > { %v409_v41 = vadd.f32 %v407_v38, %v403_v39 }
 0x157   : > { %v410_v42 = vpack.c.bf16 %v409_v41, %v408_v40 }
 0x159   : > { %1816 = vmatmul.mubr.msk.bf16.vlgmr.msra.gmra.mxu1 %vm370_vm1, %v410_v42 }
 0x15a   : > { %1903 = vmatprep.mubr.msk.bf16.mxu1 %vm2169_vm2, %v2168_v43 }
 0x219   : > { %v472_v44 = vpop.f32.mrf.mxu1 }
 0x21a   : > { %v2305_v45 = vpack.c.bf16 %v472_v44, %v472_v44 }
 0x21b   : > { %v474_v46 = vpop.f32.mrf.mxu1 }
 0x21c   : > { %484 = vrot.lane.b32.xlu0 %v2305_v45, %s2170_s8  ;;  %v2313_v52 = vpack.c.bf16 %v474_v46, %v474_v46 }
 0x21d   : > { %v476_v47 = vpop.f32.mrf.mxu1 }
 0x21e   : > { %v2308_v48 = vpack.c.bf16 %v476_v47, %v476_v47  ;;  %v614_v56 = vsel %vm612_vm4, %v2313_v52, 0 }
 0x21f   : > { %v478_v54 = vpop.f32.mrf.mxu1 }
 0x220   : > { %534 = vrot.lane.b32.xlu1 %v2308_v48, %s2170_s8  ;;  %v2317_v55 = vpack.c.bf16 %v478_v54, %v478_v54 }
 0x222   : > { %v660_v57 = vsel %vm612_vm4, %v2317_v55, 0 }
 0x28e   : > { %v485_v49 = vpop.permute.xlu0 %484 }
 0x28f   : > { %v491_v50 = vsel %vm486_vm3, %v485_v49, 0 }
 0x290   : > { %1902 = vmatpush3.bf16.xpose.msra.mxu1 %v491_v50 }
 0x291   : > { %1913 = vmatprep.subr.bf16.mxu1 %v2168_v43 }
 0x292   : > { %v535_v51 = vpop.permute.xlu1 %534 }
 0x293   : > { %v540_v53 = vsel %vm486_vm3, %v535_v51, 0 }
 0x294   : > { %1908 = vmatpush3.bf16.xpose.msra.mxu0 %v540_v53 }
 0x295   : > { %1919 = vmatprep.subr.bf16.mxu0 %v2168_v43 }
 0x297   : > { %1904 = vmatmul.mubr.msk.bf16.vlgmr.msra.gmra.mxu1 %vm486_vm3, %v2305_v45 }
 0x298   : > { %1914 = vmatpush3.bf16.msra.mxu1 %v614_v56  ;;  %1915 = vmatprep.mubr.msk.bf16.mxu1 %vm2169_vm2, %v2168_v43 }
 0x299   : > { %1925 = vmatprep.subr.bf16.mxu1 %v2168_v43 }
 0x29b   : > { %1910 = vmatmul.mubr.msk.bf16.vlgmr.msra.gmra.mxu0 %vm486_vm3, %v2308_v48 }
 0x29c   : > { %1920 = vmatpush3.bf16.msra.mxu0 %v660_v57  ;;  %1921 = vmatprep.mubr.msk.bf16.mxu0 %vm2169_vm2, %v2168_v43 }
 0x29d   : > { %1931 = vmatprep.subr.bf16.mxu0 %v2168_v43 }
 0x357   : > { %v527_v58 = vpop.f32.mrf.mxu1 }
 0x358   : > { %v583_v59 = vsel %vm582_vm5, %v527_v58, -inf }
 0x359   : > { %584 = vmax.xlane.f32.xlu1 %v583_v59  ;;  %v1905_v60 = vpop.f32.mrf.mxu1 }
 0x35b   : > { %v530_v61 = vpop.f32.mrf.mxu1  ;;  %v576_v62 = vpop.f32.mrf.mxu0 }
 0x35c   : > { %v586_v63 = vsel %vm582_vm5, %v576_v62, -inf }
 0x35d   : > { %587 = vmax.xlane.f32.xlu0 %v586_v63  ;;  %v1906_v0 = vpop.f32.mrf.mxu1  ;;  %v1911_v1 = vpop.f32.mrf.mxu0 }
 0x35f   : > { %v579_v4 = vpop.f32.mrf.mxu0 }
 0x361   : > { %v1912_v5 = vpop.f32.mrf.mxu0 }
 0x36a   : > { %754 = vrot.lane.b32.xlu1 %v2308_v48, %s2171_s10 }
 0x3e2   : > { %v585_v6 = vpop.xlane.xlu1 %584 }
 0x3e3   : > { %v589_v7 = vsub.f32 %v527_v58, %v585_v6 }
 0x3e5   : > { %v591_v8 = vmul.f32 1.442695, %v589_v7 }
 0x3e6   : > { %v588_v9 = vpop.xlane.xlu0 %587  ;;  %v755_v16 = vpop.permute.xlu1 %754 }
 0x3e7   : > { %2091 = vpow2.f32 %v591_v8  ;;  %v590_v10 = vsub.f32 %v576_v62, %v588_v9  ;;  %v760_v27 = vsel %vm486_vm3, %v755_v16, 0 }
 0x3e9   : > { %v593_v11 = vmul.f32 1.442695, %v590_v10 }
 0x3eb   : > { %2093 = vpow2.f32 %v593_v11 }
 0x3f4   : > { %v2092_v12 = vpop.eup %2091 }
 0x3f5   : > { %v595_v13 = vsel %vm582_vm5, %v2092_v12, 0.0 }
 0x3f6   : > { %596 = vadd.xlane.f32.xlu0 %v595_v13 }
 0x3f8   : > { %v2094_v14 = vpop.eup %2093 }
 0x3f9   : > { %v598_v15 = vsel %vm582_vm5, %v2094_v14, 0.0 }
 0x3fa   : > { %599 = vadd.xlane.f32.xlu1 %v598_v15 }
 0x40b   : > { %702 = vrot.lane.b32.xlu1 %v2305_v45, %s2172_s12 }
 0x40c   : > { %704 = vrot.lane.b32.xlu0 %v2305_v45, %s2171_s10 }
 0x40f   : > { %752 = vrot.lane.b32.xlu1 %v2308_v48, %s2172_s12 }
 0x47f   : > { %v597_v17 = vpop.xlane.xlu0 %596 }
 0x480   : > { %2095 = vrcp.f32 %v597_v17 }
 0x483   : > { %v600_v18 = vpop.xlane.xlu1 %599  ;;  %v705_v21 = vpop.permute.xlu0 %704 }
 0x484   : > { %2097 = vrcp.f32 %v600_v18  ;;  %v710_v24 = vsel %vm486_vm3, %v705_v21, 0 }
 0x487   : > { %v703_v29 = vpop.permute.xlu1 %702 }
 0x48b   : > { %v753_v31 = vpop.permute.xlu1 %752 }
 0x48d   : > { %v2096_v19 = vpop.eup %2095 }
 0x48e   : > { %v603_v20 = vmul.f32 %v2096_v19, %v2092_v12 }
 0x490   : > { %v605_v22 = vpack.c.bf16 %v603_v20, %v603_v20 }
 0x491   : > { %v2098_v23 = vpop.eup %2097 }
 0x492   : > { %1916 = vmatmul.mubr.msk.bf16.vlgmr.msra.gmra.mxu1 %vm582_vm5, %v605_v22  ;;  %v604_v25 = vmul.f32 %v2098_v23, %v2094_v14 }
 0x493   : > { %1926 = vmatpush3.bf16.xpose.msra.mxu1 %v710_v24  ;;  %1927 = vmatprep.mubr.msk.bf16.mxu1 %vm2169_vm2, %v2168_v43 }
 0x494   : > { %v606_v26 = vpack.c.bf16 %v604_v25, %v604_v25  ;;  %1937 = vmatprep.subr.bf16.mxu1 %v2168_v43 }
 0x496   : > { %1922 = vmatmul.mubr.msk.bf16.vlgmr.msra.gmra.mxu0 %vm582_vm5, %v606_v26 }
 0x497   : > { %1932 = vmatpush3.bf16.xpose.msra.mxu0 %v760_v27  ;;  %1933 = vmatprep.mubr.msk.bf16.mxu0 %vm2169_vm2, %v2168_v43 }
 0x498   : > { %1943 = vmatprep.subr.bf16.mxu0 %v2168_v43 }
 0x49a   : > { %1928 = vmatmul.mubr.msk.bf16.vlgmr.msra.gmra.mxu1 %vm486_vm3, %v703_v29 }
 0x49b   : > { %1939 = vmatprep.mubr.msk.bf16.mxu1 %vm2169_vm2, %v2168_v43 }
 0x49e   : > { %1934 = vmatmul.mubr.msk.bf16.vlgmr.msra.gmra.mxu0 %vm486_vm3, %v753_v31 }
 0x49f   : > { %1945 = vmatprep.mubr.msk.bf16.mxu0 %vm2169_vm2, %v2168_v43 }
 0x552   : > { %v2361_v32 = vpop.f32.mrf.mxu1 }
 0x554   : > { %v1917_v33 = vpop.f32.mrf.mxu1 }
 0x556   : > { %v653_v34 = vpop.f32.mrf.mxu1  ;;  %v2363_v35 = vpop.f32.mrf.mxu0 }
 0x558   : > { %v1918_v36 = vpop.f32.mrf.mxu1  ;;  %v1923_v37 = vpop.f32.mrf.mxu0 }
 0x55a   : > { %v699_v38 = vpop.f32.mrf.mxu0  ;;  %v746_v39 = vpop.f32.mrf.mxu1 }
 0x55b   : > { %v802_v40 = vsel %vm582_vm5, %v746_v39, -inf }
 0x55c   : > { %v1924_v41 = vpop.f32.mrf.mxu0  ;;  %803 = vmax.xlane.f32.xlu0 %v802_v40  ;;  %v1929_v42 = vpop.f32.mrf.mxu1 }
 0x55e   : > { %v749_v44 = vpop.f32.mrf.mxu1  ;;  %v796_v46 = vpop.f32.mrf.mxu0 }
 0x55f   : > { %v805_v47 = vsel %vm582_vm5, %v796_v46, -inf }
 0x560   : > { %806 = vmax.xlane.f32.xlu1 %v805_v47  ;;  %v1930_v49 = vpop.f32.mrf.mxu1  ;;  %v1935_v50 = vpop.f32.mrf.mxu0 }
 0x562   : > { %v799_v51 = vpop.f32.mrf.mxu0 }
 0x564   : > { %v1936_v53 = vpop.f32.mrf.mxu0 }
 0x571   : > { %876 = vrot.lane.b32.xlu1 %v2317_v55, %s2172_s12 }
 0x575   : > { %926 = vrot.lane.b32.xlu1 %v2305_v45, %s2173_s13 }
 0x579   : > { %976 = vrot.lane.b32.xlu1 %v2308_v48, %s2173_s13 }
 0x57d   : > { %974 = vrot.lane.b32.xlu1 %v2308_v48, %s2174_s15 }
 0x5e5   : > { %v804_v54 = vpop.xlane.xlu0 %803 }
 0x5e6   : > { %v808_v56 = vsub.f32 %v746_v39, %v804_v54 }
 0x5e8   : > { %v810_v57 = vmul.f32 1.442695, %v808_v56 }
 0x5e9   : > { %v807_v58 = vpop.xlane.xlu1 %806 }
 0x5ea   : > { %2099 = vpow2.f32 %v810_v57  ;;  %v809_v59 = vsub.f32 %v796_v46, %v807_v58 }
 0x5ec   : > { %v812_v60 = vmul.f32 1.442695, %v809_v59 }
 0x5ed   : > { %v877_v61 = vpop.permute.xlu1 %876 }
 0x5ee   : > { %2101 = vpow2.f32 %v812_v60  ;;  %v882_v62 = vsel %vm612_vm4, %v877_v61, 0 }
 0x5ef   : > { %1944 = vmatpush3.bf16.msra.mxu0 %v882_v62 }
 0x5f0   : > { %1955 = vmatprep.subr.bf16.mxu0 %v2168_v43 }
 0x5f1   : > { %v927_v10 = vpop.permute.xlu1 %926 }
 0x5f2   : > { %v932_v14 = vsel %vm486_vm3, %v927_v10, 0 }
 0x5f5   : > { %v977_v16 = vpop.permute.xlu1 %976 }
 0x5f6   : > { %v982_v18 = vsel %vm486_vm3, %v977_v16, 0 }
 0x5f7   : > { %v2100_v63 = vpop.eup %2099 }
 0x5f8   : > { %v814_v0 = vsel %vm582_vm5, %v2100_v63, 0.0 }
 0x5f9   : > { %815 = vadd.xlane.f32.xlu0 %v814_v0  ;;  %v975_v20 = vpop.permute.xlu1 %974 }
 0x5fb   : > { %v2102_v1 = vpop.eup %2101 }
 0x5fc   : > { %v817_v4 = vsel %vm582_vm5, %v2102_v1, 0.0 }
 0x5fd   : > { %818 = vadd.xlane.f32.xlu0 %v817_v4 }
 0x613   : > { %827 = vrot.lane.b32.xlu0 %v2313_v52, %s2172_s12 }
 0x617   : > { %924 = vrot.lane.b32.xlu0 %v2305_v45, %s2174_s15 }
 0x682   : > { %v816_v5 = vpop.xlane.xlu0 %815 }
 0x683   : > { %2103 = vrcp.f32 %v816_v5 }
 0x686   : > { %v819_v6 = vpop.xlane.xlu0 %818 }
 0x687   : > { %2105 = vrcp.f32 %v819_v6 }
 0x68a   : > { %v828_v7 = vpop.permute.xlu0 %827 }
 0x68b   : > { %v833_v8 = vsel %vm612_vm4, %v828_v7, 0 }
 0x68c   : > { %1938 = vmatpush3.bf16.msra.mxu1 %v833_v8 }
 0x68d   : > { %1949 = vmatprep.subr.bf16.mxu1 %v2168_v43 }
 0x68e   : > { %v925_v19 = vpop.permute.xlu0 %924 }
 0x690   : > { %v2104_v9 = vpop.eup %2103 }
 0x691   : > { %v822_v11 = vmul.f32 %v2104_v9, %v2100_v63 }
 0x693   : > { %v824_v12 = vpack.c.bf16 %v822_v11, %v822_v11 }
 0x694   : > { %v2106_v13 = vpop.eup %2105 }
 0x695   : > { %1940 = vmatmul.mubr.msk.bf16.vlgmr.msra.gmra.mxu1 %vm582_vm5, %v824_v12  ;;  %v823_v15 = vmul.f32 %v2106_v13, %v2102_v1 }
 0x696   : > { %1950 = vmatpush3.bf16.xpose.msra.mxu1 %v932_v14  ;;  %1951 = vmatprep.mubr.msk.bf16.mxu1 %vm2169_vm2, %v2168_v43 }
 0x697   : > { %v825_v17 = vpack.c.bf16 %v823_v15, %v823_v15  ;;  %1961 = vmatprep.subr.bf16.mxu1 %v2168_v43 }
 0x699   : > { %1946 = vmatmul.mubr.msk.bf16.vlgmr.msra.gmra.mxu0 %vm582_vm5, %v825_v17 }
 0x69a   : > { %1956 = vmatpush3.bf16.xpose.msra.mxu0 %v982_v18  ;;  %1957 = vmatprep.mubr.msk.bf16.mxu0 %vm2169_vm2, %v2168_v43 }
 0x69b   : > { %1967 = vmatprep.subr.bf16.mxu0 %v2168_v43 }
 0x69d   : > { %1952 = vmatmul.mubr.msk.bf16.vlgmr.msra.gmra.mxu1 %vm486_vm3, %v925_v19 }
 0x69e   : > { %1963 = vmatprep.mubr.msk.bf16.mxu1 %vm2169_vm2, %v2168_v43 }
 0x6a1   : > { %1958 = vmatmul.mubr.msk.bf16.vlgmr.msra.gmra.mxu0 %vm486_vm3, %v975_v20 }
 0x6a2   : > { %1969 = vmatprep.mubr.msk.bf16.mxu0 %vm2169_vm2, %v2168_v43 }
 0x755   : > { %v2401_v21 = vpop.f32.mrf.mxu1 }
 0x757   : > { %v1941_v22 = vpop.f32.mrf.mxu1 }
 0x759   : > { %v872_v23 = vpop.f32.mrf.mxu1  ;;  %v2403_v24 = vpop.f32.mrf.mxu0 }
 0x75a   : > { %v2056_v25 = vpack.i.bf16 %v2403_v24, %v2401_v21 }
 0x75b   : > { %v1942_v26 = vpop.f32.mrf.mxu1  ;;  %v1947_v27 = vpop.f32.mrf.mxu0 }
 0x75d   : > { %v921_v29 = vpop.f32.mrf.mxu0  ;;  %v968_v31 = vpop.f32.mrf.mxu1 }
 0x75e   : > { %v1024_v33 = vsel %vm582_vm5, %v968_v31, -inf }
 0x75f   : > { %v1948_v34 = vpop.f32.mrf.mxu0  ;;  %1025 = vmax.xlane.f32.xlu0 %v1024_v33  ;;  %v1953_v36 = vpop.f32.mrf.mxu1 }
 0x761   : > { %v971_v37 = vpop.f32.mrf.mxu1  ;;  %v1018_v38 = vpop.f32.mrf.mxu0 }
 0x762   : > { %v1027_v39 = vsel %vm582_vm5, %v1018_v38, -inf }
 0x763   : > { %1028 = vmax.xlane.f32.xlu1 %v1027_v39  ;;  %v1954_v40 = vpop.f32.mrf.mxu1  ;;  %v1959_v41 = vpop.f32.mrf.mxu0 }
 0x765   : > { %v1021_v42 = vpop.f32.mrf.mxu0 }
 0x767   : > { %v1960_v44 = vpop.f32.mrf.mxu0 }
 0x774   : > { %1096 = vrot.lane.b32.xlu1 %v2317_v55, %s2174_s15 }
 0x778   : > { %1146 = vrot.lane.b32.xlu1 %v2305_v45, %s2175_s16 }
 0x77c   : > { %1196 = vrot.lane.b32.xlu1 %v2308_v48, %s2175_s16 }
 0x780   : > { %1194 = vrot.lane.b32.xlu1 %v2308_v48, %s2176_s18 }
 0x7e8   : > { %v1026_v46 = vpop.xlane.xlu0 %1025 }
 0x7e9   : > { %v1030_v47 = vsub.f32 %v968_v31, %v1026_v46 }
 0x7eb   : > { %v1032_v49 = vmul.f32 1.442695, %v1030_v47 }
 0x7ec   : > { %v1029_v50 = vpop.xlane.xlu1 %1028 }
 0x7ed   : > { %2107 = vpow2.f32 %v1032_v49  ;;  %v1031_v51 = vsub.f32 %v1018_v38, %v1029_v50 }
 0x7ef   : > { %v1034_v53 = vmul.f32 1.442695, %v1031_v51 }
 0x7f0   : > { %v1097_v54 = vpop.permute.xlu1 %1096 }
 0x7f1   : > { %2109 = vpow2.f32 %v1034_v53  ;;  %v1102_v56 = vsel %vm612_vm4, %v1097_v54, 0 }
 0x7f2   : > { %1968 = vmatpush3.bf16.msra.mxu0 %v1102_v56 }
 0x7f3   : > { %1979 = vmatprep.subr.bf16.mxu0 %v2168_v43 }
 0x7f4   : > { %v1147_v1 = vpop.permute.xlu1 %1146 }
 0x7f5   : > { %v1152_v7 = vsel %vm486_vm3, %v1147_v1, 0 }
 0x7f8   : > { %v1197_v8 = vpop.permute.xlu1 %1196 }
 0x7f9   : > { %v1202_v10 = vsel %vm486_vm3, %v1197_v8, 0 }
 0x7fa   : > { %v2108_v57 = vpop.eup %2107 }
 0x7fb   : > { %v1036_v58 = vsel %vm582_vm5, %v2108_v57, 0.0 }
 0x7fc   : > { %1037 = vadd.xlane.f32.xlu0 %v1036_v58  ;;  %v1195_v12 = vpop.permute.xlu1 %1194 }
 0x7fe   : > { %v2110_v59 = vpop.eup %2109 }
 0x7ff   : > { %v1039_v48 = vsel %vm582_vm5, %v2110_v59, 0.0 }
 0x800   : > { %1040 = vadd.xlane.f32.xlu0 %v1039_v48 }
 0x816   : > { %1048 = vrot.lane.b32.xlu0 %v2313_v52, %s2174_s15 }
 0x81a   : > { %1144 = vrot.lane.b32.xlu0 %v2305_v45, %s2176_s18 }
 0x885   : > { %v1038_v60 = vpop.xlane.xlu0 %1037 }
 0x886   : > { %2111 = vrcp.f32 %v1038_v60  ;;  %v2077_v60 = vld [vmem:[%s2244_s11 + $0x18] sm:$0xff]  }
 0x889   : > { %v1041_v61 = vpop.xlane.xlu0 %1040 }
 0x88a   : > { %2113 = vrcp.f32 %v1041_v61  ;;  %v2078_v61 = vld [vmem:[%s2244_s11 + $0x10] sm:$0xff]  }
 0x88d   : > { %v1049_v62 = vpop.permute.xlu0 %1048 }
 0x88e   : > { %v1054_v63 = vsel %vm612_vm4, %v1049_v62, 0  ;;  %v2079_v62 = vld [vmem:[%s2244_s11 + $0x8] sm:$0xff]  }
 0x88f   : > { %1962 = vmatpush3.bf16.msra.mxu1 %v1054_v63  ;;  %v2080_v63 = vld [vmem:[%s2244_s11] sm:$0xff]  }
 0x890   : > { %1973 = vmatprep.subr.bf16.mxu1 %v2168_v43 }
 0x891   : > { %v1145_v11 = vpop.permute.xlu0 %1144 }
 0x893   : > { %v2112_v0 = vpop.eup %2111 }
 0x894   : > { %v1044_v4 = vmul.f32 %v2112_v0, %v2108_v57 }
 0x896   : > { %v1046_v5 = vpack.c.bf16 %v1044_v4, %v1044_v4 }
 0x897   : > { %v2114_v6 = vpop.eup %2113 }
 0x898   : > { %1964 = vmatmul.mubr.msk.bf16.vlgmr.msra.gmra.mxu1 %vm582_vm5, %v1046_v5  ;;  %v1045_v45 = vmul.f32 %v2114_v6, %v2110_v59 }
 0x899   : > { %1974 = vmatpush3.bf16.xpose.msra.mxu1 %v1152_v7  ;;  %1975 = vmatprep.mubr.msk.bf16.mxu1 %vm2169_vm2, %v2168_v43 }
 0x89a   : > { %v1047_v9 = vpack.c.bf16 %v1045_v45, %v1045_v45  ;;  %1985 = vmatprep.subr.bf16.mxu1 %v2168_v43 }
 0x89c   : > { %1970 = vmatmul.mubr.msk.bf16.vlgmr.msra.gmra.mxu0 %vm582_vm5, %v1047_v9 }
 0x89d   : > { %1980 = vmatpush3.bf16.xpose.msra.mxu0 %v1202_v10  ;;  %1981 = vmatprep.mubr.msk.bf16.mxu0 %vm2169_vm2, %v2168_v43 }
 0x89e   : > { %1991 = vmatprep.subr.bf16.mxu0 %v2168_v43 }
 0x8a0   : > { %1976 = vmatmul.mubr.msk.bf16.vlgmr.msra.gmra.mxu1 %vm486_vm3, %v1145_v11 }
 0x8a1   : > { %1987 = vmatprep.mubr.msk.bf16.mxu1 %vm2169_vm2, %v2168_v43 }
 0x8a4   : > { %1982 = vmatmul.mubr.msk.bf16.vlgmr.msra.gmra.mxu0 %vm486_vm3, %v1195_v12 }
 0x8a5   : > { %1993 = vmatprep.mubr.msk.bf16.mxu0 %vm2169_vm2, %v2168_v43 }
 0x958   : > { %v1090_v13 = vpop.f32.mrf.mxu1 }
 0x95a   : > { %v1965_v14 = vpop.f32.mrf.mxu1 }
 0x95c   : > { %v1093_v15 = vpop.f32.mrf.mxu1  ;;  %v1138_v16 = vpop.f32.mrf.mxu0 }
 0x95d   : > { %v2061_v38 = vpack.i.bf16 %v1138_v16, %v1090_v13 }
 0x95e   : > { %v1966_v17 = vpop.f32.mrf.mxu1  ;;  %v1971_v18 = vpop.f32.mrf.mxu0 }
 0x960   : > { %v1141_v19 = vpop.f32.mrf.mxu0  ;;  %v1188_v20 = vpop.f32.mrf.mxu1 }
 0x961   : > { %v1244_v22 = vsel %vm582_vm5, %v1188_v20, -inf }
 0x962   : > { %v1972_v23 = vpop.f32.mrf.mxu0  ;;  %1245 = vmax.xlane.f32.xlu0 %v1244_v22  ;;  %v1977_v26 = vpop.f32.mrf.mxu1 }
 0x964   : > { %v1191_v27 = vpop.f32.mrf.mxu1  ;;  %v1238_v29 = vpop.f32.mrf.mxu0 }
 0x965   : > { %v1247_v31 = vsel %vm582_vm5, %v1238_v29, -inf }
 0x966   : > { %1248 = vmax.xlane.f32.xlu1 %v1247_v31  ;;  %v1978_v33 = vpop.f32.mrf.mxu1  ;;  %v1983_v34 = vpop.f32.mrf.mxu0  ;;  %v1406_v31 = vsub.s32 2, %v2289_v28 }
 0x968   : > { %v1241_v36 = vpop.f32.mrf.mxu0  ;;  %v1407_v33 = vrot.slane %v2293_v30, %v1406_v31 }
 0x96a   : > { %v1984_v37 = vpop.f32.mrf.mxu0 }
 0x977   : > { %1316 = vrot.lane.b32.xlu1 %v2317_v55, %s2176_s18 }
 0x97b   : > { %2057 = vrot.lane.b32.xlu1 %v2056_v25, %s2175_s16 }
 0x97f   : > { %2062 = vrot.lane.b32.xlu1 %v2061_v38, %s2173_s13 }
 0x9eb   : > { %v1246_v39 = vpop.xlane.xlu0 %1245 }
 0x9ec   : > { %v1250_v40 = vsub.f32 %v1188_v20, %v1246_v39 }
 0x9ee   : > { %v1252_v41 = vmul.f32 1.442695, %v1250_v40 }
 0x9ef   : > { %v1249_v42 = vpop.xlane.xlu1 %1248 }
 0x9f0   : > { %2115 = vpow2.f32 %v1252_v41  ;;  %v1251_v44 = vsub.f32 %v1238_v29, %v1249_v42 }
 0x9f2   : > { %v1254_v46 = vmul.f32 1.442695, %v1251_v44 }
 0x9f3   : > { %v1317_v47 = vpop.permute.xlu1 %1316 }
 0x9f4   : > { %2117 = vpow2.f32 %v1254_v46  ;;  %v1322_v49 = vsel %vm612_vm4, %v1317_v47, 0 }
 0x9f5   : > { %1992 = vmatpush3.bf16.msra.mxu0 %v1322_v49 }
 0x9f6   : > { %2009 = vmatprep.subr.bf16.mxu0 %v2168_v43 }
 0x9f7   : > { %v2058_v10 = vpop.permute.xlu1 %2057 }
 0x9f8   : > { %v2060_v12 = vunpack.i.h.bf16 %v2058_v10  ;;  %v2059_v13 = vunpack.i.l.bf16 %v2058_v10  ;;  %v2085_v10 = vld [vmem:[%s2254_s17 + $0x8] sm:$0xff]  }
 0x9fa   : > { %v1389_v17 = vsel %vm486_vm3, %v2363_v35, %v2060_v12  ;;  %v1388_v18 = vsel %vm486_vm3, %v2361_v32, %v2059_v13  ;;  %v1838_v12 = vld [vmem:[%s355_s21] ss:$0 sm:$0xff] }
 0x9fb   : > { %v2063_v11 = vpop.permute.xlu1 %2062 }
 0x9fc   : > { %v2065_v14 = vunpack.i.h.bf16 %v2063_v11  ;;  %v2064_v15 = vunpack.i.l.bf16 %v2063_v11  ;;  %v2086_v11 = vld [vmem:[%s2254_s17] sm:$0xff]  }
 0x9fd   : > { %v2116_v55 = vpop.eup %2115 }
 0x9fe   : > { %v1256_v21 = vsel %vm582_vm5, %v2116_v55, 0.0  ;;  %v1391_v22 = vsel %vm370_vm1, %v1389_v17, %v2065_v14  ;;  %v1390_v23 = vsel %vm370_vm1, %v1388_v18, %v2064_v15 }
 0x9ff   : > { %1257 = vadd.xlane.f32.xlu0 %v1256_v21 }
 0xa01   : > { %v2118_v24 = vpop.eup %2117 }
 0xa02   : > { %v1259_v25 = vsel %vm582_vm5, %v2118_v24, 0.0 }
 0xa03   : > { %1260 = vadd.xlane.f32.xlu0 %v1259_v25 }
 0xa19   : > { %1268 = vrot.lane.b32.xlu0 %v2313_v52, %s2176_s18 }
 0xa88   : > { %v1258_v50 = vpop.xlane.xlu0 %1257 }
 0xa89   : > { %2119 = vrcp.f32 %v1258_v50  ;;  %v2081_v50 = vld [vmem:[%s2249_s14 + $0x8] sm:$0xff]  }
 0xa8c   : > { %v1261_v51 = vpop.xlane.xlu0 %1260 }
 0xa8d   : > { %2121 = vrcp.f32 %v1261_v51  ;;  %v2082_v51 = vld [vmem:[%s2249_s14] sm:$0xff]  }
 0xa90   : > { %v1269_v53 = vpop.permute.xlu0 %1268 }
 0xa91   : > { %v1274_v54 = vsel %vm612_vm4, %v1269_v53, 0 }
 0xa92   : > { %1986 = vmatpush3.bf16.msra.mxu1 %v1274_v54 }
 0xa93   : > { %1997 = vmatprep.subr.bf16.mxu1 %v2168_v43 }
 0xa96   : > { %v2120_v56 = vpop.eup %2119 }
 0xa97   : > { %v1264_v57 = vmul.f32 %v2120_v56, %v2116_v55 }
 0xa99   : > { %v1266_v58 = vpack.c.bf16 %v1264_v57, %v1264_v57 }
 0xa9a   : > { %v2122_v59 = vpop.eup %2121 }
 0xa9b   : > { %1988 = vmatmul.mubr.msk.bf16.vlgmr.msra.gmra.mxu1 %vm582_vm5, %v1266_v58  ;;  %v1265_v52 = vmul.f32 %v2122_v59, %v2118_v24 }
 0xa9c   : > { %2005 = vmatprep.mubr.msk.bf16.mxu1 %vm2169_vm2, %v2168_v43  ;;  %1998 = vmatpush3.bf16.msra.mxu1 %v2077_v60 }
 0xa9d   : > { %v1267_v48 = vpack.c.bf16 %v1265_v52, %v1265_v52  ;;  %1999 = vmatprep.subr.bf16.mxu1 %v2168_v43  ;;  %v1507_v52 = vsub.s32 3, %v2289_v28 }
 0xa9f   : > { %1994 = vmatmul.mubr.msk.bf16.vlgmr.msra.gmra.mxu0 %vm582_vm5, %v1267_v48 }
 0xaa0   : > { %2013 = vmatprep.mubr.msk.bf16.mxu0 %vm2169_vm2, %v2168_v43  ;;  %2000 = vmatpush3.bf16.msra.mxu1 %v2078_v61  ;;  %v1508_v61 = vrot.slane %v2293_v30, %v1507_v52 }
 0xaa1   : > { %2001 = vmatprep.subr.bf16.mxu1 %v2168_v43  ;;  %2010 = vmatpush3.bf16.msra.mxu0 %v2081_v50 }
 0xaa2   : > { %2011 = vmatprep.subr.bf16.mxu0 %v2168_v43 }
 0xaa4   : > { %2002 = vmatpush3.bf16.msra.mxu1 %v2079_v62  ;;  %v1513_v62 = vsub.s32 4, %v2289_v28 }
 0xaa5   : > { %2003 = vmatprep.subr.bf16.mxu1 %v2168_v43  ;;  %2012 = vmatpush3.bf16.msra.mxu0 %v2082_v51 }
 0xaa6   : > { %2017 = vmatprep.subr.bf16.mxu0 %v2168_v43 }
 0xaa8   : > { %2004 = vmatpush3.bf16.msra.mxu1 %v2080_v63 }
 0xb5b   : > { %v1310_v0 = vpop.f32.mrf.mxu1 }
 0xb5d   : > { %v1989_v1 = vpop.f32.mrf.mxu1 }
 0xb5f   : > { %v1313_v4 = vpop.f32.mrf.mxu1  ;;  %v1358_v5 = vpop.f32.mrf.mxu0 }
 0xb60   : > { %v2066_v6 = vpack.i.bf16 %v1358_v5, %v1310_v0  ;;  %v1514_v4 = vrot.slane %v2293_v30, %v1513_v62 }
 0xb61   : > { %v1990_v7 = vpop.f32.mrf.mxu1  ;;  %v1995_v45 = vpop.f32.mrf.mxu0 }
 0xb62   : > { %2067 = vrot.lane.b32.xlu0 %v2066_v6, %s2171_s10 }
 0xb63   : > { %v1361_v8 = vpop.f32.mrf.mxu0 }
 0xb64   : > { %v2083_v8 = vld [vmem:[%s2254_s17 + $0x18] sm:$0xff]  }
 0xb65   : > { %v1996_v9 = vpop.f32.mrf.mxu0 }
 0xb66   : > { %v2084_v9 = vld [vmem:[%s2254_s17 + $0x10] sm:$0xff]  }
 0xbd4   : > { %v2068_v16 = vpop.permute.xlu0 %2067 }
 0xbd5   : > { %v2070_v19 = vunpack.i.h.bf16 %v2068_v16  ;;  %v2069_v20 = vunpack.i.l.bf16 %v2068_v16 }
 0xbd7   : > { %v1394_v26 = vsel %vm1392_vm6, %v1391_v22, %v2070_v19  ;;  %v1393_v27 = vsel %vm1392_vm6, %v1390_v23, %v2069_v20 }
 0xbd8   : > { %v1395_v29 = vpack.c.bf16 %v1394_v26, %v1393_v27 }
 0xbda   : > { %2006 = vmatmul.mubr.msk.bf16.vlgmr.msra.gmra.mxu1 %vm1432_vm7, %v1395_v29 }
 0xc9a   : > { %v1470_v35 = vpop.f32.mrf.mxu1 }
 0xc9b   : > { %v1471_v34 = vadd.f32 %v1470_v35, %v1407_v33 }
 0xc9c   : > { %v2007_v36 = vpop.f32.mrf.mxu1 }
 0xc9d   : > { %v2484_v32 = vadd.f32 %v1471_v34, %v2273_v2 }
 0xc9e   : > { %v1473_v37 = vpop.f32.mrf.mxu1 }
 0xc9f   : > { %v1474_v38 = vadd.f32 %v1473_v37, %v1407_v33  ;;  %v1479_v39 = vsel %vm370_vm1, %v2484_v32, 0.0 }
 0xca0   : > { %1480 = vadd.xlane.f32.xlu1 %v1479_v39  ;;  %v2008_v40 = vpop.f32.mrf.mxu1 }
 0xca1   : > { %v2489_v41 = vadd.f32 %v1474_v38, %v2275_v3 }
 0xca3   : > { %v1482_v42 = vsel %vm370_vm1, %v2489_v41, 0.0 }
 0xca4   : > { %1483 = vadd.xlane.f32.xlu0 %v1482_v42 }
 0xd29   : > { %v1481_v44 = vpop.xlane.xlu1 %1480 }
 0xd2a   : > { %v1485_v46 = vmul.f32 0.03125, %v1481_v44 }
 0xd2c   : > { %v1487_v2 = vsub.f32 %v2484_v32, %v1485_v46  ;;  %v1613_v46 = vsub.s32 5, %v2289_v28 }
 0xd2d   : > { %v1484_v47 = vpop.xlane.xlu0 %1483 }
 0xd2e   : > { %v1486_v49 = vmul.f32 0.03125, %v1484_v47  ;;  %v1489_v55 = vmul.f32 %v1487_v2, %v1487_v2 }
 0xd30   : > { %v1488_v21 = vsub.f32 %v2489_v41, %v1486_v49  ;;  %v1491_v24 = vsel %vm370_vm1, %v1489_v55, 0.0 }
 0xd31   : > { %1492 = vadd.xlane.f32.xlu0 %v1491_v24 }
 0xd32   : > { %v1490_v25 = vmul.f32 %v1488_v21, %v1488_v21 }
 0xd34   : > { %v1494_v3 = vsel %vm370_vm1, %v1490_v25, 0.0 }
 0xd35   : > { %1495 = vadd.xlane.f32.xlu0 %v1494_v3 }
 0xdba   : > { %v1493_v53 = vpop.xlane.xlu0 %1492 }
 0xdbb   : > { %v1497_v54 = vmul.f32 0.03125, %v1493_v53 }
 0xdbd   : > { %v1499_v56 = vadd.f32 1e-05, %v1497_v54 }
 0xdbe   : > { %v1496_v57 = vpop.xlane.xlu0 %1495 }
 0xdbf   : > { %2123 = vrsqrt.f32 %v1499_v56  ;;  %v1498_v58 = vmul.f32 0.03125, %v1496_v57 }
 0xdc1   : > { %v1500_v59 = vadd.f32 1e-05, %v1498_v58 }
 0xdc3   : > { %2125 = vrsqrt.f32 %v1500_v59 }
 0xdcc   : > { %v2124_v48 = vpop.eup %2123 }
 0xdcd   : > { %v1503_v60 = vmul.f32 %v2124_v48, %v1487_v2  ;;  %v1614_v2 = vrot.slane %v2293_v30, %v1613_v46 }
 0xdcf   : > { %v1509_v1 = vmul.f32 %v1508_v61, %v1503_v60 }
 0xdd0   : > { %v2126_v63 = vpop.eup %2125 }
 0xdd1   : > { %v1504_v0 = vmul.f32 %v2126_v63, %v1488_v21  ;;  %v1515_v6 = vadd.f32 %v1514_v4, %v1509_v1 }
 0xdd3   : > { %v1510_v5 = vmul.f32 %v1508_v61, %v1504_v0 }
 0xdd5   : > { %v1516_v7 = vadd.f32 %v1514_v4, %v1510_v5 }
 0xdd7   : > { %v1517_v45 = vpack.c.bf16 %v1516_v7, %v1515_v6 }
 0xdd9   : > { %2014 = vmatmul.mubr.msk.bf16.vlgmr.msra.gmra.mxu0 %vm370_vm1, %v1517_v45 }
 0xdda   : > { %2025 = vmatprep.mubr.msk.bf16.mxu0 %vm2169_vm2, %v2168_v43  ;;  %2018 = vmatpush3.bf16.msra.mxu0 %v2083_v8 }
 0xddb   : > { %2019 = vmatprep.subr.bf16.mxu0 %v2168_v43 }
 0xdde   : > { %2020 = vmatpush3.bf16.msra.mxu0 %v2084_v9 }
 0xddf   : > { %2021 = vmatprep.subr.bf16.mxu0 %v2168_v43 }
 0xde2   : > { %2022 = vmatpush3.bf16.msra.mxu0 %v2085_v10 }
 0xde3   : > { %2023 = vmatprep.subr.bf16.mxu0 %v2168_v43 }
 0xde6   : > { %2024 = vmatpush3.bf16.msra.mxu0 %v2086_v11 }
 0xe99   : > { %v1577_v13 = vpop.f32.mrf.mxu0 }
 0xe9a   : > { %v1578_v14 = vadd.f32 %v1838_v12, %v1577_v13 }
 0xe9b   : > { %v2015_v15 = vpop.f32.mrf.mxu0 }
 0xe9c   : > { %v1586_v16 = vmul.f32 0.044715, %v1578_v14  ;;  %v1584_v37 = vmul.f32 0.5, %v1578_v14 }
 0xe9d   : > { %v1580_v17 = vpop.f32.mrf.mxu0 }
 0xe9e   : > { %v1588_v18 = vmul.f32 %v1586_v16, %v1578_v14  ;;  %v1581_v19 = vadd.f32 %v1838_v12, %v1580_v17 }
 0xe9f   : > { %v2016_v20 = vpop.f32.mrf.mxu0 }
 0xea0   : > { %v1590_v22 = vmul.f32 %v1588_v18, %v1578_v14  ;;  %v1587_v23 = vmul.f32 0.044715, %v1581_v19  ;;  %v1585_v38 = vmul.f32 0.5, %v1581_v19 }
 0xea2   : > { %v1592_v26 = vadd.f32 %v1590_v22, %v1578_v14  ;;  %v1589_v27 = vmul.f32 %v1587_v23, %v1581_v19 }
 0xea4   : > { %v1594_v29 = vmul.f32 0.7978846, %v1592_v26  ;;  %v1591_v43 = vmul.f32 %v1589_v27, %v1581_v19 }
 0xea6   : > { %2127 = vtanh.f32 %v1594_v29  ;;  %v1593_v31 = vadd.f32 %v1591_v43, %v1581_v19 }
 0xea8   : > { %v1595_v33 = vmul.f32 0.7978846, %v1593_v31 }
 0xeaa   : > { %2129 = vtanh.f32 %v1595_v33 }
 0xeb3   : > { %v2128_v35 = vpop.eup %2127 }
 0xeb4   : > { %v1598_v34 = vadd.f32 1.0, %v2128_v35 }
 0xeb6   : > { %v1600_v40 = vmul.f32 %v1598_v34, %v1584_v37 }
 0xeb7   : > { %v2130_v36 = vpop.eup %2129 }
 0xeb8   : > { %v1599_v39 = vadd.f32 1.0, %v2130_v36 }
 0xeba   : > { %v1601_v42 = vmul.f32 %v1599_v39, %v1585_v38 }
 0xebc   : > { %v1602_v44 = vpack.c.bf16 %v1601_v42, %v1600_v40 }
 0xebe   : > { %2026 = vmatmul.mubr.msk.bf16.vlgmr.msra.gmra.mxu0 %vm1432_vm7, %v1602_v44 }
 0xf7e   : > { %v1676_v47 = vpop.f32.mrf.mxu0 }
 0xf7f   : > { %v1677_v49 = vadd.f32 %v1676_v47, %v1614_v2 }
 0xf80   : > { %v2027_v55 = vpop.f32.mrf.mxu0 }
 0xf81   : > { %v1683_v21 = vadd.f32 %v1677_v49, %v2484_v32 }
 0xf82   : > { %v1679_v24 = vpop.f32.mrf.mxu0 }
 0xf83   : > { %1685 = vst.msk [vmem:[#allocation2] sm:$0xff] %vm370_vm1, %v1683_v21  ;;  %v1680_v25 = vadd.f32 %v1679_v24, %v1614_v2  ;;  %1690 = sbr.rel (%p1847_p5) target bundleno = 3977 (0xf89), region = 56 }
 0xf84   : > { %v2028_v3 = vpop.f32.mrf.mxu0 }
 0xf85   : > { %v1684_v50 = vadd.f32 %v1680_v25, %v2489_v41 }
 0xf87   : > { %1686 = vst.msk [vmem:[#allocation2 + $0x8] sm:$0xff] %vm370_vm1, %v1684_v50 }
 0xf88   : > { %1691 = vst.msk [vmem:[#allocation3] sm:$0xff] %vm370_vm1, %v1683_v21  ;;  %1692 = vst.msk [vmem:[#allocation3 + $0x8] sm:$0xff] %vm370_vm1, %v1684_v50 }
 0xf89 PF: > { %p2033_p6 = scmp.eq.s32.totalorder %s2226_s25, 1  ;;  %s2177_s26 = smov [#allocation3]  }
 0xf8a   : > { %s1699_s17 = sshll.u32 %s2177_s26, 4  ;;  %s1700_s17 = int_to_ptr.vmem [resolvable:$true] %s1699_s17 }
 0xf8b   : > { %s2131_s19 = scalar_lea.vmem %s1700_s17, 256  ;;  %p2138_p10 = scmp.lt.s32.totalorder %s1700_s17, %s1700_s17 }
 0xf8c   : > { %p2132_p7 = scmp.ne.s32.totalorder %s1700_s17, %s2131_s19  ;;  %p2139_p11 = scmp.lt.s32.totalorder %s2131_s19, %s2131_s19 }
 0xf8e   : > { %p2133_p8 = pnand %p2132_p7, %p2033_p6  ;;  %p2140_p12 = por %p2139_p11, %p2138_p10 }
 0xf90   : > { %p2134_p9 = pneg %p2133_p8 }
 0xf92   : > { %p2141_p13 = pnand %p2140_p12, %p2134_p9 }
 0xf94   : > { %2144 = shalt.err (!%p2141_p13)
}
 0xf95   : > { %s2178_s20 = smov 128   ;;  %s2179_s21 = smov 8  }
 0xf96   : > { %2030 = dma.vmem_to_hbm [thread:$0]  (%p2033_p6), %s1700_s17, 256, %s2552_s7, [#allocation4], %s2178_s20, %s2178_s20, %s2179_s21  }
 0xf97   : > { %2160 = dma.done.wait (%p2033_p6), [#allocation4], 256  }
 0xf98   : > { %2162 = vsyncadd (%p2033_p6), [#allocation4], 4294967040 }
 0xf99 PF: > { %s18_s24 = sadd.s32 1, %s2165_s24  }
 0xf9a   : > { %p15_p0 = scmp.ge.s32.totalorder %s18_s24, 4  }
 0xf9c   :  { %17 = sbr.rel (!%p15_p0) target bundleno = 1 (0x1), region = 98 }
 0xfa1   :  { %1715 = vsyncpa [#allocation4], 1 }
 0xfa2   :  { %1717 = vsyncpa [#allocation4 + $0x1], 1 }

</bundles_post_ra>
